<compile_context>
chip_gen: v6e
topology: v6e:2x2x1
jax: 0.10.0
libtpu: 0.0.40
codegen_flags: <defaults>
</compile_context>

<pallas_src>
import functools

import jax
import jax.numpy as jnp
from jax import lax
from jax.experimental import pallas as pl
from jax.experimental.pallas import tpu as pltpu


def _round_up(x, m):
    return ((x + m - 1) // m) * m


def lstm_recurrence_kernel(gx_ref, whh_ref, h_out_ref, *, seq_len, hidden_pad,
                           batch_pad, unroll):
    """Serial LSTM recurrence over a VMEM-resident precomputed-gate block.

    gx_ref   : (S, B_pad, 4*H_pad) f32   x_t @ W_ih^T + (b_ih + b_hh), per step
    whh_ref  : (H_pad, 4*H_pad)          W_hh^T (possibly bf16)
    h_out_ref: (B_pad, H_pad) f32        final hidden state
    """
    H = hidden_pad
    whh = whh_ref[...]                      # resident for the whole loop

    def step(t, carry):
        h, c = carry                        # (B_pad, H_pad) f32 each
        gates = gx_ref[t] + jnp.dot(h.astype(whh.dtype), whh,
                                    preferred_element_type=jnp.float32)
        # PyTorch gate order: i, f, g, o — each slice is lane-aligned (H_pad%128==0).
        i_g = jax.nn.sigmoid(gates[:, 0 * H:1 * H])
        f_g = jax.nn.sigmoid(gates[:, 1 * H:2 * H])
        g_g = jnp.tanh(gates[:, 2 * H:3 * H])
        o_g = jax.nn.sigmoid(gates[:, 3 * H:4 * H])
        c_new = f_g * c + i_g * g_g
        h_new = o_g * jnp.tanh(c_new)
        return (h_new, c_new)

    h0 = jnp.zeros((batch_pad, H), jnp.float32)
    c0 = jnp.zeros((batch_pad, H), jnp.float32)
    h_final, _ = lax.fori_loop(0, seq_len, step, (h0, c0), unroll=unroll)
    h_out_ref[...] = h_final


def _pad_gate_rows(w, h, h_pad):
    """Pad each of the 4 gate blocks along axis 0 from h to h_pad rows."""
    blocks = jnp.split(w, 4, axis=0)
    pad_cfg = ((0, h_pad - h),) + tuple((0, 0) for _ in range(w.ndim - 1))
    return jnp.concatenate([jnp.pad(b, pad_cfg) for b in blocks], axis=0)


def lstm_model_forward(x, w_ih, w_hh, b_ih, b_hh, w_fc, b_fc,
                       *, matmul_dtype=jnp.float32):
    """x: (B, S, D) f32.  PyTorch-convention params:
       w_ih (4H, D), w_hh (4H, H), b_ih (4H,), b_hh (4H,), w_fc (1, H), b_fc (1,).
    Returns (B, 1) f32, identical semantics to LSTMModel.forward.
    Set matmul_dtype=jnp.bfloat16 on v6e/v7x to halve MXU-operand bytes
    (accumulation and cell state stay f32)."""
    B, S, D = x.shape
    H = w_hh.shape[1]
    B_pad = max(8, _round_up(B, 8))          # sublane multiple
    H_pad = _round_up(H, 128)                # lane multiple -> aligned gate slices

    x = x.astype(jnp.float32)
    x_p = jnp.pad(x, ((0, B_pad - B), (0, 0), (0, 0)))            # (B_pad, S, D)

    # Padded weights: per-gate row padding to H_pad (gate order preserved).
    w_ih_p = _pad_gate_rows(w_ih.astype(jnp.float32), H, H_pad)   # (4*H_pad, D)
    w_hh_p = _pad_gate_rows(w_hh.astype(jnp.float32), H, H_pad)   # (4*H_pad, H)
    w_hh_p = jnp.pad(w_hh_p, ((0, 0), (0, H_pad - H)))            # (4*H_pad, H_pad)
    b_p = _pad_gate_rows((b_ih + b_hh).astype(jnp.float32).reshape(4 * H, 1),
                         H, H_pad).reshape(4 * H_pad)             # (4*H_pad,)

    # Hoisted input projection: one big GEMM outside the recurrence.
    # (B_pad, S, D) @ (D, 4*H_pad) -> time-major (S, B_pad, 4*H_pad), f32.
    gx = jnp.einsum('bsd,dg->sbg', x_p.astype(matmul_dtype),
                    w_ih_p.T.astype(matmul_dtype),
                    preferred_element_type=jnp.float32) + b_p[None, None, :]
    gx = gx.astype(jnp.float32)

    whh_t = w_hh_p.T.astype(matmul_dtype)                          # (H_pad, 4*H_pad)

    kernel = functools.partial(
        lstm_recurrence_kernel,
        seq_len=S, hidden_pad=H_pad, batch_pad=B_pad,
        unroll=(S <= 16))                                          # short fixed loop

    h_final = pl.pallas_call(
        kernel,
        out_shape=jax.ShapeDtypeStruct((B_pad, H_pad), jnp.float32),
        grid_spec=pltpu.PrefetchScalarGridSpec(
            num_scalar_prefetch=0,
            grid=(1,),                                             # single grid step
            in_specs=[
                pl.BlockSpec((S, B_pad, 4 * H_pad), lambda i: (0, 0, 0)),  # gx
                pl.BlockSpec((H_pad, 4 * H_pad), lambda i: (0, 0)),        # W_hh^T
            ],
            out_specs=pl.BlockSpec((B_pad, H_pad), lambda i: (0, 0)),
        ),
        compiler_params=pltpu.CompilerParams(
            dimension_semantics=("arbitrary",)),
    )(gx, whh_t)

    # Tiny FC head done lane-dense outside the kernel (avoids last-dim-1 store).
    h_last = h_final[:B, :H]                                       # (B, H)
    return h_last @ w_fc.astype(jnp.float32).T + b_fc.astype(jnp.float32)


def lstm_model_reference(x, w_ih, w_hh, b_ih, b_hh, w_fc, b_fc):
    """Pure-JAX reference matching torch.nn.LSTM + Linear semantics."""
    B, S, D = x.shape
    H = w_hh.shape[1]
    h = jnp.zeros((B, H), jnp.float32)
    c = jnp.zeros((B, H), jnp.float32)
    for t in range(S):
        gates = x[:, t, :] @ w_ih.T + b_ih + h @ w_hh.T + b_hh
        i = jax.nn.sigmoid(gates[:, 0 * H:1 * H])
        f = jax.nn.sigmoid(gates[:, 1 * H:2 * H])
        g = jnp.tanh(gates[:, 2 * H:3 * H])
        o = jax.nn.sigmoid(gates[:, 3 * H:4 * H])
        c = f * c + i * g
        h = o * jnp.tanh(c)
    return h @ w_fc.T + b_fc


if __name__ == "__main__":
    # Small shapes consistent with the module's forward.
    batch, seq, input_dim, hidden_dim = 2, 8, 16, 32

    key = jax.random.PRNGKey(0)
    keys = jax.random.split(key, 7)
    scale = 1.0 / jnp.sqrt(hidden_dim)

    x = jax.random.normal(keys[0], (batch, seq, input_dim), jnp.float32)
    w_ih = jax.random.uniform(keys[1], (4 * hidden_dim, input_dim),
                              jnp.float32, -scale, scale)
    w_hh = jax.random.uniform(keys[2], (4 * hidden_dim, hidden_dim),
                              jnp.float32, -scale, scale)
    b_ih = jax.random.uniform(keys[3], (4 * hidden_dim,),
                              jnp.float32, -scale, scale)
    b_hh = jax.random.uniform(keys[4], (4 * hidden_dim,),
                              jnp.float32, -scale, scale)
    w_fc = jax.random.uniform(keys[5], (1, hidden_dim),
                              jnp.float32, -scale, scale)
    b_fc = jax.random.uniform(keys[6], (1,), jnp.float32, -scale, scale)

    out = lstm_model_forward(x, w_ih, w_hh, b_ih, b_hh, w_fc, b_fc)
    out = jax.block_until_ready(out)

    ref = lstm_model_reference(x, w_ih, w_hh, b_ih, b_hh, w_fc, b_fc)
    assert out.shape == (batch, 1), out.shape
    assert jnp.allclose(out, ref, atol=1e-5, rtol=1e-5), (out, ref)

    print("KERNEL_OK")
</pallas_src>

<mosaic_0001>
module attributes {stable_mosaic.version = 11 : i64} {
  func.func @lstm_recurrence_kernel(%arg0: i32, %arg1: memref<8x8x512xf32, #tpu.memory_space<vmem>>, %arg2: memref<128x512xf32, #tpu.memory_space<vmem>>, %arg3: memref<8x128xf32, #tpu.memory_space<vmem>>) attributes {dimension_semantics = [#tpu.dimension_semantics<arbitrary>], iteration_bounds = array<i64: 1>, scalar_prefetch = 0 : i64, scratch_operands = 0 : i64, tpu.core_type = #tpu.core_type<tc>, window_params = [{pipeline_mode = #tpu.pipeline_mode<synchronous>, transform_indices = @transform_0, window_bounds = array<i64: 8, 8, 512>}, {pipeline_mode = #tpu.pipeline_mode<synchronous>, transform_indices = @transform_1, window_bounds = array<i64: 128, 512>}, {pipeline_mode = #tpu.pipeline_mode<synchronous>, transform_indices = @transform_2, window_bounds = array<i64: 8, 128>}]} {
    %c0 = arith.constant 0 : index
    %c0_0 = arith.constant 0 : index
    %0 = vector.load %arg2[%c0, %c0_0] : memref<128x512xf32, #tpu.memory_space<vmem>>, vector<128x512xf32>
    %cst = arith.constant 0.000000e+00 : f32
    %1 = vector.broadcast %cst : f32 to vector<8x128xf32>
    %cst_1 = arith.constant 0.000000e+00 : f32
    %2 = vector.broadcast %cst_1 : f32 to vector<8x128xf32>
    %c0_i32 = arith.constant 0 : i32
    %3 = arith.index_cast %c0_i32 : i32 to index
    %c0_2 = arith.constant 0 : index
    %c0_3 = arith.constant 0 : index
    %4 = vector.load %arg1[%3, %c0_2, %c0_3] : memref<8x8x512xf32, #tpu.memory_space<vmem>>, vector<1x8x512xf32>
    %5 = vector.shape_cast %4 : vector<1x8x512xf32> to vector<8x512xf32>
    %cst_4 = arith.constant dense<0.000000e+00> : vector<8x512xf32>
    %6 = tpu.matmul %1, %0, %cst_4 {dimension_numbers = #tpu.dot_dimension_numbers<[1], [0], [0], [1], [0, 0, 1, 1], [], []>} : vector<8x128xf32>, vector<128x512xf32>, vector<8x512xf32> -> vector<8x512xf32>
    %7 = arith.addf %5, %6 : vector<8x512xf32>
    %8 = vector.extract_strided_slice %7 {offsets = [0, 0], sizes = [8, 128], strides = [1, 1]} : vector<8x512xf32> to vector<8x128xf32>
    %9 = arith.negf %8 : vector<8x128xf32>
    %10 = math.exp %9 : vector<8x128xf32>
    %cst_5 = arith.constant 1.000000e+00 : f32
    %11 = vector.broadcast %cst_5 : f32 to vector<8x128xf32>
    %12 = arith.addf %11, %10 : vector<8x128xf32>
    %13 = arith.divf %11, %12 : vector<8x128xf32>
    %14 = vector.extract_strided_slice %7 {offsets = [0, 128], sizes = [8, 128], strides = [1, 1]} : vector<8x512xf32> to vector<8x128xf32>
    %15 = arith.negf %14 : vector<8x128xf32>
    %16 = math.exp %15 : vector<8x128xf32>
    %cst_6 = arith.constant 1.000000e+00 : f32
    %17 = vector.broadcast %cst_6 : f32 to vector<8x128xf32>
    %18 = arith.addf %17, %16 : vector<8x128xf32>
    %19 = arith.divf %17, %18 : vector<8x128xf32>
    %20 = vector.extract_strided_slice %7 {offsets = [0, 256], sizes = [8, 128], strides = [1, 1]} : vector<8x512xf32> to vector<8x128xf32>
    %21 = math.tanh %20 : vector<8x128xf32>
    %22 = vector.extract_strided_slice %7 {offsets = [0, 384], sizes = [8, 128], strides = [1, 1]} : vector<8x512xf32> to vector<8x128xf32>
    %23 = arith.negf %22 : vector<8x128xf32>
    %24 = math.exp %23 : vector<8x128xf32>
    %cst_7 = arith.constant 1.000000e+00 : f32
    %25 = vector.broadcast %cst_7 : f32 to vector<8x128xf32>
    %26 = arith.addf %25, %24 : vector<8x128xf32>
    %27 = arith.divf %25, %26 : vector<8x128xf32>
    %28 = arith.mulf %19, %2 : vector<8x128xf32>
    %29 = arith.mulf %13, %21 : vector<8x128xf32>
    %30 = arith.addf %28, %29 : vector<8x128xf32>
    %31 = math.tanh %30 : vector<8x128xf32>
    %32 = arith.mulf %27, %31 : vector<8x128xf32>
    %c1_i32 = arith.constant 1 : i32
    %33 = arith.index_cast %c1_i32 : i32 to index
    %c0_8 = arith.constant 0 : index
    %c0_9 = arith.constant 0 : index
    %34 = vector.load %arg1[%33, %c0_8, %c0_9] : memref<8x8x512xf32, #tpu.memory_space<vmem>>, vector<1x8x512xf32>
    %35 = vector.shape_cast %34 : vector<1x8x512xf32> to vector<8x512xf32>
    %cst_10 = arith.constant dense<0.000000e+00> : vector<8x512xf32>
    %36 = tpu.matmul %32, %0, %cst_10 {dimension_numbers = #tpu.dot_dimension_numbers<[1], [0], [0], [1], [0, 0, 1, 1], [], []>} : vector<8x128xf32>, vector<128x512xf32>, vector<8x512xf32> -> vector<8x512xf32>
    %37 = arith.addf %35, %36 : vector<8x512xf32>
    %38 = vector.extract_strided_slice %37 {offsets = [0, 0], sizes = [8, 128], strides = [1, 1]} : vector<8x512xf32> to vector<8x128xf32>
    %39 = arith.negf %38 : vector<8x128xf32>
    %40 = math.exp %39 : vector<8x128xf32>
    %cst_11 = arith.constant 1.000000e+00 : f32
    %41 = vector.broadcast %cst_11 : f32 to vector<8x128xf32>
    %42 = arith.addf %41, %40 : vector<8x128xf32>
    %43 = arith.divf %41, %42 : vector<8x128xf32>
    %44 = vector.extract_strided_slice %37 {offsets = [0, 128], sizes = [8, 128], strides = [1, 1]} : vector<8x512xf32> to vector<8x128xf32>
    %45 = arith.negf %44 : vector<8x128xf32>
    %46 = math.exp %45 : vector<8x128xf32>
    %cst_12 = arith.constant 1.000000e+00 : f32
    %47 = vector.broadcast %cst_12 : f32 to vector<8x128xf32>
    %48 = arith.addf %47, %46 : vector<8x128xf32>
    %49 = arith.divf %47, %48 : vector<8x128xf32>
    %50 = vector.extract_strided_slice %37 {offsets = [0, 256], sizes = [8, 128], strides = [1, 1]} : vector<8x512xf32> to vector<8x128xf32>
    %51 = math.tanh %50 : vector<8x128xf32>
    %52 = vector.extract_strided_slice %37 {offsets = [0, 384], sizes = [8, 128], strides = [1, 1]} : vector<8x512xf32> to vector<8x128xf32>
    %53 = arith.negf %52 : vector<8x128xf32>
    %54 = math.exp %53 : vector<8x128xf32>
    %cst_13 = arith.constant 1.000000e+00 : f32
    %55 = vector.broadcast %cst_13 : f32 to vector<8x128xf32>
    %56 = arith.addf %55, %54 : vector<8x128xf32>
    %57 = arith.divf %55, %56 : vector<8x128xf32>
    %58 = arith.mulf %49, %30 : vector<8x128xf32>
    %59 = arith.mulf %43, %51 : vector<8x128xf32>
    %60 = arith.addf %58, %59 : vector<8x128xf32>
    %61 = math.tanh %60 : vector<8x128xf32>
    %62 = arith.mulf %57, %61 : vector<8x128xf32>
    %c2_i32 = arith.constant 2 : i32
    %63 = arith.index_cast %c2_i32 : i32 to index
    %c0_14 = arith.constant 0 : index
    %c0_15 = arith.constant 0 : index
    %64 = vector.load %arg1[%63, %c0_14, %c0_15] : memref<8x8x512xf32, #tpu.memory_space<vmem>>, vector<1x8x512xf32>
    %65 = vector.shape_cast %64 : vector<1x8x512xf32> to vector<8x512xf32>
    %cst_16 = arith.constant dense<0.000000e+00> : vector<8x512xf32>
    %66 = tpu.matmul %62, %0, %cst_16 {dimension_numbers = #tpu.dot_dimension_numbers<[1], [0], [0], [1], [0, 0, 1, 1], [], []>} : vector<8x128xf32>, vector<128x512xf32>, vector<8x512xf32> -> vector<8x512xf32>
    %67 = arith.addf %65, %66 : vector<8x512xf32>
    %68 = vector.extract_strided_slice %67 {offsets = [0, 0], sizes = [8, 128], strides = [1, 1]} : vector<8x512xf32> to vector<8x128xf32>
    %69 = arith.negf %68 : vector<8x128xf32>
    %70 = math.exp %69 : vector<8x128xf32>
    %cst_17 = arith.constant 1.000000e+00 : f32
    %71 = vector.broadcast %cst_17 : f32 to vector<8x128xf32>
    %72 = arith.addf %71, %70 : vector<8x128xf32>
    %73 = arith.divf %71, %72 : vector<8x128xf32>
    %74 = vector.extract_strided_slice %67 {offsets = [0, 128], sizes = [8, 128], strides = [1, 1]} : vector<8x512xf32> to vector<8x128xf32>
    %75 = arith.negf %74 : vector<8x128xf32>
    %76 = math.exp %75 : vector<8x128xf32>
    %cst_18 = arith.constant 1.000000e+00 : f32
    %77 = vector.broadcast %cst_18 : f32 to vector<8x128xf32>
    %78 = arith.addf %77, %76 : vector<8x128xf32>
    %79 = arith.divf %77, %78 : vector<8x128xf32>
    %80 = vector.extract_strided_slice %67 {offsets = [0, 256], sizes = [8, 128], strides = [1, 1]} : vector<8x512xf32> to vector<8x128xf32>
    %81 = math.tanh %80 : vector<8x128xf32>
    %82 = vector.extract_strided_slice %67 {offsets = [0, 384], sizes = [8, 128], strides = [1, 1]} : vector<8x512xf32> to vector<8x128xf32>
    %83 = arith.negf %82 : vector<8x128xf32>
    %84 = math.exp %83 : vector<8x128xf32>
    %cst_19 = arith.constant 1.000000e+00 : f32
    %85 = vector.broadcast %cst_19 : f32 to vector<8x128xf32>
    %86 = arith.addf %85, %84 : vector<8x128xf32>
    %87 = arith.divf %85, %86 : vector<8x128xf32>
    %88 = arith.mulf %79, %60 : vector<8x128xf32>
    %89 = arith.mulf %73, %81 : vector<8x128xf32>
    %90 = arith.addf %88, %89 : vector<8x128xf32>
    %91 = math.tanh %90 : vector<8x128xf32>
    %92 = arith.mulf %87, %91 : vector<8x128xf32>
    %c3_i32 = arith.constant 3 : i32
    %93 = arith.index_cast %c3_i32 : i32 to index
    %c0_20 = arith.constant 0 : index
    %c0_21 = arith.constant 0 : index
    %94 = vector.load %arg1[%93, %c0_20, %c0_21] : memref<8x8x512xf32, #tpu.memory_space<vmem>>, vector<1x8x512xf32>
    %95 = vector.shape_cast %94 : vector<1x8x512xf32> to vector<8x512xf32>
    %cst_22 = arith.constant dense<0.000000e+00> : vector<8x512xf32>
    %96 = tpu.matmul %92, %0, %cst_22 {dimension_numbers = #tpu.dot_dimension_numbers<[1], [0], [0], [1], [0, 0, 1, 1], [], []>} : vector<8x128xf32>, vector<128x512xf32>, vector<8x512xf32> -> vector<8x512xf32>
    %97 = arith.addf %95, %96 : vector<8x512xf32>
    %98 = vector.extract_strided_slice %97 {offsets = [0, 0], sizes = [8, 128], strides = [1, 1]} : vector<8x512xf32> to vector<8x128xf32>
    %99 = arith.negf %98 : vector<8x128xf32>
    %100 = math.exp %99 : vector<8x128xf32>
    %cst_23 = arith.constant 1.000000e+00 : f32
    %101 = vector.broadcast %cst_23 : f32 to vector<8x128xf32>
    %102 = arith.addf %101, %100 : vector<8x128xf32>
    %103 = arith.divf %101, %102 : vector<8x128xf32>
    %104 = vector.extract_strided_slice %97 {offsets = [0, 128], sizes = [8, 128], strides = [1, 1]} : vector<8x512xf32> to vector<8x128xf32>
    %105 = arith.negf %104 : vector<8x128xf32>
    %106 = math.exp %105 : vector<8x128xf32>
    %cst_24 = arith.constant 1.000000e+00 : f32
    %107 = vector.broadcast %cst_24 : f32 to vector<8x128xf32>
    %108 = arith.addf %107, %106 : vector<8x128xf32>
    %109 = arith.divf %107, %108 : vector<8x128xf32>
    %110 = vector.extract_strided_slice %97 {offsets = [0, 256], sizes = [8, 128], strides = [1, 1]} : vector<8x512xf32> to vector<8x128xf32>
    %111 = math.tanh %110 : vector<8x128xf32>
    %112 = vector.extract_strided_slice %97 {offsets = [0, 384], sizes = [8, 128], strides = [1, 1]} : vector<8x512xf32> to vector<8x128xf32>
    %113 = arith.negf %112 : vector<8x128xf32>
    %114 = math.exp %113 : vector<8x128xf32>
    %cst_25 = arith.constant 1.000000e+00 : f32
    %115 = vector.broadcast %cst_25 : f32 to vector<8x128xf32>
    %116 = arith.addf %115, %114 : vector<8x128xf32>
    %117 = arith.divf %115, %116 : vector<8x128xf32>
    %118 = arith.mulf %109, %90 : vector<8x128xf32>
    %119 = arith.mulf %103, %111 : vector<8x128xf32>
    %120 = arith.addf %118, %119 : vector<8x128xf32>
    %121 = math.tanh %120 : vector<8x128xf32>
    %122 = arith.mulf %117, %121 : vector<8x128xf32>
    %c4_i32 = arith.constant 4 : i32
    %123 = arith.index_cast %c4_i32 : i32 to index
    %c0_26 = arith.constant 0 : index
    %c0_27 = arith.constant 0 : index
    %124 = vector.load %arg1[%123, %c0_26, %c0_27] : memref<8x8x512xf32, #tpu.memory_space<vmem>>, vector<1x8x512xf32>
    %125 = vector.shape_cast %124 : vector<1x8x512xf32> to vector<8x512xf32>
    %cst_28 = arith.constant dense<0.000000e+00> : vector<8x512xf32>
    %126 = tpu.matmul %122, %0, %cst_28 {dimension_numbers = #tpu.dot_dimension_numbers<[1], [0], [0], [1], [0, 0, 1, 1], [], []>} : vector<8x128xf32>, vector<128x512xf32>, vector<8x512xf32> -> vector<8x512xf32>
    %127 = arith.addf %125, %126 : vector<8x512xf32>
    %128 = vector.extract_strided_slice %127 {offsets = [0, 0], sizes = [8, 128], strides = [1, 1]} : vector<8x512xf32> to vector<8x128xf32>
    %129 = arith.negf %128 : vector<8x128xf32>
    %130 = math.exp %129 : vector<8x128xf32>
    %cst_29 = arith.constant 1.000000e+00 : f32
    %131 = vector.broadcast %cst_29 : f32 to vector<8x128xf32>
    %132 = arith.addf %131, %130 : vector<8x128xf32>
    %133 = arith.divf %131, %132 : vector<8x128xf32>
    %134 = vector.extract_strided_slice %127 {offsets = [0, 128], sizes = [8, 128], strides = [1, 1]} : vector<8x512xf32> to vector<8x128xf32>
    %135 = arith.negf %134 : vector<8x128xf32>
    %136 = math.exp %135 : vector<8x128xf32>
    %cst_30 = arith.constant 1.000000e+00 : f32
    %137 = vector.broadcast %cst_30 : f32 to vector<8x128xf32>
    %138 = arith.addf %137, %136 : vector<8x128xf32>
    %139 = arith.divf %137, %138 : vector<8x128xf32>
    %140 = vector.extract_strided_slice %127 {offsets = [0, 256], sizes = [8, 128], strides = [1, 1]} : vector<8x512xf32> to vector<8x128xf32>
    %141 = math.tanh %140 : vector<8x128xf32>
    %142 = vector.extract_strided_slice %127 {offsets = [0, 384], sizes = [8, 128], strides = [1, 1]} : vector<8x512xf32> to vector<8x128xf32>
    %143 = arith.negf %142 : vector<8x128xf32>
    %144 = math.exp %143 : vector<8x128xf32>
    %cst_31 = arith.constant 1.000000e+00 : f32
    %145 = vector.broadcast %cst_31 : f32 to vector<8x128xf32>
    %146 = arith.addf %145, %144 : vector<8x128xf32>
    %147 = arith.divf %145, %146 : vector<8x128xf32>
    %148 = arith.mulf %139, %120 : vector<8x128xf32>
    %149 = arith.mulf %133, %141 : vector<8x128xf32>
    %150 = arith.addf %148, %149 : vector<8x128xf32>
    %151 = math.tanh %150 : vector<8x128xf32>
    %152 = arith.mulf %147, %151 : vector<8x128xf32>
    %c5_i32 = arith.constant 5 : i32
    %153 = arith.index_cast %c5_i32 : i32 to index
    %c0_32 = arith.constant 0 : index
    %c0_33 = arith.constant 0 : index
    %154 = vector.load %arg1[%153, %c0_32, %c0_33] : memref<8x8x512xf32, #tpu.memory_space<vmem>>, vector<1x8x512xf32>
    %155 = vector.shape_cast %154 : vector<1x8x512xf32> to vector<8x512xf32>
    %cst_34 = arith.constant dense<0.000000e+00> : vector<8x512xf32>
    %156 = tpu.matmul %152, %0, %cst_34 {dimension_numbers = #tpu.dot_dimension_numbers<[1], [0], [0], [1], [0, 0, 1, 1], [], []>} : vector<8x128xf32>, vector<128x512xf32>, vector<8x512xf32> -> vector<8x512xf32>
    %157 = arith.addf %155, %156 : vector<8x512xf32>
    %158 = vector.extract_strided_slice %157 {offsets = [0, 0], sizes = [8, 128], strides = [1, 1]} : vector<8x512xf32> to vector<8x128xf32>
    %159 = arith.negf %158 : vector<8x128xf32>
    %160 = math.exp %159 : vector<8x128xf32>
    %cst_35 = arith.constant 1.000000e+00 : f32
    %161 = vector.broadcast %cst_35 : f32 to vector<8x128xf32>
    %162 = arith.addf %161, %160 : vector<8x128xf32>
    %163 = arith.divf %161, %162 : vector<8x128xf32>
    %164 = vector.extract_strided_slice %157 {offsets = [0, 128], sizes = [8, 128], strides = [1, 1]} : vector<8x512xf32> to vector<8x128xf32>
    %165 = arith.negf %164 : vector<8x128xf32>
    %166 = math.exp %165 : vector<8x128xf32>
    %cst_36 = arith.constant 1.000000e+00 : f32
    %167 = vector.broadcast %cst_36 : f32 to vector<8x128xf32>
    %168 = arith.addf %167, %166 : vector<8x128xf32>
    %169 = arith.divf %167, %168 : vector<8x128xf32>
    %170 = vector.extract_strided_slice %157 {offsets = [0, 256], sizes = [8, 128], strides = [1, 1]} : vector<8x512xf32> to vector<8x128xf32>
    %171 = math.tanh %170 : vector<8x128xf32>
    %172 = vector.extract_strided_slice %157 {offsets = [0, 384], sizes = [8, 128], strides = [1, 1]} : vector<8x512xf32> to vector<8x128xf32>
    %173 = arith.negf %172 : vector<8x128xf32>
    %174 = math.exp %173 : vector<8x128xf32>
    %cst_37 = arith.constant 1.000000e+00 : f32
    %175 = vector.broadcast %cst_37 : f32 to vector<8x128xf32>
    %176 = arith.addf %175, %174 : vector<8x128xf32>
    %177 = arith.divf %175, %176 : vector<8x128xf32>
    %178 = arith.mulf %169, %150 : vector<8x128xf32>
    %179 = arith.mulf %163, %171 : vector<8x128xf32>
    %180 = arith.addf %178, %179 : vector<8x128xf32>
    %181 = math.tanh %180 : vector<8x128xf32>
    %182 = arith.mulf %177, %181 : vector<8x128xf32>
    %c6_i32 = arith.constant 6 : i32
    %183 = arith.index_cast %c6_i32 : i32 to index
    %c0_38 = arith.constant 0 : index
    %c0_39 = arith.constant 0 : index
    %184 = vector.load %arg1[%183, %c0_38, %c0_39] : memref<8x8x512xf32, #tpu.memory_space<vmem>>, vector<1x8x512xf32>
    %185 = vector.shape_cast %184 : vector<1x8x512xf32> to vector<8x512xf32>
    %cst_40 = arith.constant dense<0.000000e+00> : vector<8x512xf32>
    %186 = tpu.matmul %182, %0, %cst_40 {dimension_numbers = #tpu.dot_dimension_numbers<[1], [0], [0], [1], [0, 0, 1, 1], [], []>} : vector<8x128xf32>, vector<128x512xf32>, vector<8x512xf32> -> vector<8x512xf32>
    %187 = arith.addf %185, %186 : vector<8x512xf32>
    %188 = vector.extract_strided_slice %187 {offsets = [0, 0], sizes = [8, 128], strides = [1, 1]} : vector<8x512xf32> to vector<8x128xf32>
    %189 = arith.negf %188 : vector<8x128xf32>
    %190 = math.exp %189 : vector<8x128xf32>
    %cst_41 = arith.constant 1.000000e+00 : f32
    %191 = vector.broadcast %cst_41 : f32 to vector<8x128xf32>
    %192 = arith.addf %191, %190 : vector<8x128xf32>
    %193 = arith.divf %191, %192 : vector<8x128xf32>
    %194 = vector.extract_strided_slice %187 {offsets = [0, 128], sizes = [8, 128], strides = [1, 1]} : vector<8x512xf32> to vector<8x128xf32>
    %195 = arith.negf %194 : vector<8x128xf32>
    %196 = math.exp %195 : vector<8x128xf32>
    %cst_42 = arith.constant 1.000000e+00 : f32
    %197 = vector.broadcast %cst_42 : f32 to vector<8x128xf32>
    %198 = arith.addf %197, %196 : vector<8x128xf32>
    %199 = arith.divf %197, %198 : vector<8x128xf32>
    %200 = vector.extract_strided_slice %187 {offsets = [0, 256], sizes = [8, 128], strides = [1, 1]} : vector<8x512xf32> to vector<8x128xf32>
    %201 = math.tanh %200 : vector<8x128xf32>
    %202 = vector.extract_strided_slice %187 {offsets = [0, 384], sizes = [8, 128], strides = [1, 1]} : vector<8x512xf32> to vector<8x128xf32>
    %203 = arith.negf %202 : vector<8x128xf32>
    %204 = math.exp %203 : vector<8x128xf32>
    %cst_43 = arith.constant 1.000000e+00 : f32
    %205 = vector.broadcast %cst_43 : f32 to vector<8x128xf32>
    %206 = arith.addf %205, %204 : vector<8x128xf32>
    %207 = arith.divf %205, %206 : vector<8x128xf32>
    %208 = arith.mulf %199, %180 : vector<8x128xf32>
    %209 = arith.mulf %193, %201 : vector<8x128xf32>
    %210 = arith.addf %208, %209 : vector<8x128xf32>
    %211 = math.tanh %210 : vector<8x128xf32>
    %212 = arith.mulf %207, %211 : vector<8x128xf32>
    %c7_i32 = arith.constant 7 : i32
    %213 = arith.index_cast %c7_i32 : i32 to index
    %c0_44 = arith.constant 0 : index
    %c0_45 = arith.constant 0 : index
    %214 = vector.load %arg1[%213, %c0_44, %c0_45] : memref<8x8x512xf32, #tpu.memory_space<vmem>>, vector<1x8x512xf32>
    %215 = vector.shape_cast %214 : vector<1x8x512xf32> to vector<8x512xf32>
    %cst_46 = arith.constant dense<0.000000e+00> : vector<8x512xf32>
    %216 = tpu.matmul %212, %0, %cst_46 {dimension_numbers = #tpu.dot_dimension_numbers<[1], [0], [0], [1], [0, 0, 1, 1], [], []>} : vector<8x128xf32>, vector<128x512xf32>, vector<8x512xf32> -> vector<8x512xf32>
    %217 = arith.addf %215, %216 : vector<8x512xf32>
    %218 = vector.extract_strided_slice %217 {offsets = [0, 0], sizes = [8, 128], strides = [1, 1]} : vector<8x512xf32> to vector<8x128xf32>
    %219 = arith.negf %218 : vector<8x128xf32>
    %220 = math.exp %219 : vector<8x128xf32>
    %cst_47 = arith.constant 1.000000e+00 : f32
    %221 = vector.broadcast %cst_47 : f32 to vector<8x128xf32>
    %222 = arith.addf %221, %220 : vector<8x128xf32>
    %223 = arith.divf %221, %222 : vector<8x128xf32>
    %224 = vector.extract_strided_slice %217 {offsets = [0, 128], sizes = [8, 128], strides = [1, 1]} : vector<8x512xf32> to vector<8x128xf32>
    %225 = arith.negf %224 : vector<8x128xf32>
    %226 = math.exp %225 : vector<8x128xf32>
    %cst_48 = arith.constant 1.000000e+00 : f32
    %227 = vector.broadcast %cst_48 : f32 to vector<8x128xf32>
    %228 = arith.addf %227, %226 : vector<8x128xf32>
    %229 = arith.divf %227, %228 : vector<8x128xf32>
    %230 = vector.extract_strided_slice %217 {offsets = [0, 256], sizes = [8, 128], strides = [1, 1]} : vector<8x512xf32> to vector<8x128xf32>
    %231 = math.tanh %230 : vector<8x128xf32>
    %232 = vector.extract_strided_slice %217 {offsets = [0, 384], sizes = [8, 128], strides = [1, 1]} : vector<8x512xf32> to vector<8x128xf32>
    %233 = arith.negf %232 : vector<8x128xf32>
    %234 = math.exp %233 : vector<8x128xf32>
    %cst_49 = arith.constant 1.000000e+00 : f32
    %235 = vector.broadcast %cst_49 : f32 to vector<8x128xf32>
    %236 = arith.addf %235, %234 : vector<8x128xf32>
    %237 = arith.divf %235, %236 : vector<8x128xf32>
    %238 = arith.mulf %229, %210 : vector<8x128xf32>
    %239 = arith.mulf %223, %231 : vector<8x128xf32>
    %240 = arith.addf %238, %239 : vector<8x128xf32>
    %241 = math.tanh %240 : vector<8x128xf32>
    %242 = arith.mulf %237, %241 : vector<8x128xf32>
    %c8_i32 = arith.constant 8 : i32
    %c0_50 = arith.constant 0 : index
    %c0_51 = arith.constant 0 : index
    %243 = vector.load %arg3[%c0_50, %c0_51] : memref<8x128xf32, #tpu.memory_space<vmem>>, vector<8x128xf32>
    tpu.vector_store %arg3[%c0_50, %c0_51], %242 {strides = array<i32>} : memref<8x128xf32, #tpu.memory_space<vmem>>, vector<8x128xf32>,
    return
  }
  func.func @transform_0(%arg0: i32) -> (i32, i32, i32) {
    %c0_i32 = arith.constant 0 : i32
    %c0_i32_0 = arith.constant 0 : i32
    %c0_i32_1 = arith.constant 0 : i32
    %c0_i32_2 = arith.constant 0 : i32
    return %c0_i32, %c0_i32_0, %c0_i32_1 : i32, i32, i32
  }
  func.func @transform_1(%arg0: i32) -> (i32, i32) {
    %c0_i32 = arith.constant 0 : i32
    %c0_i32_0 = arith.constant 0 : i32
    %c0_i32_1 = arith.constant 0 : i32
    return %c0_i32, %c0_i32_0 : i32, i32
  }
  func.func @transform_2(%arg0: i32) -> (i32, i32) {
    %c0_i32 = arith.constant 0 : i32
    %c0_i32_0 = arith.constant 0 : i32
    %c0_i32_1 = arith.constant 0 : i32
    return %c0_i32, %c0_i32_0 : i32, i32
  }
}

</mosaic_0001>

<bundles_post_ra>
// kernel: tpu_custom_call.1
= control target key start
LH: loop header
LB: loop body
LE: loop exit
PB: predicated region body
PF: predicated region fallthrough
CT: control target
= control target key end

     0   :  { %7 = vsyncpa [#allocation3], 0  ;;  %s2648_s0 = inlined_call_operand.hbm [shape: f32[8,8,512], index: 0, kind: input, shape index: {}]   ;;  %s2649_s1 = inlined_call_operand.hbm [shape: f32[128,512], index: 1, kind: input, shape index: {}]   ;;  %s2650_s2 = inlined_call_operand.hbm [shape: f32[8,128], index: 2, kind: output, shape index: {}]  }
   0x1   :  { %8 = vsyncpa [#allocation6], 0 }
   0x2   :  { %9 = vsyncpa [#allocation4], 0  ;;  %s1808_s9 = smov [#allocation2]  }
   0x3   :  { %s15_s10 = sshll.u32 %s1808_s9, 4  ;;  %s16_s10 = int_to_ptr.vmem [resolvable:$true] %s15_s10 }
   0x4   :  { %s1750_s11 = scalar_lea.vmem %s16_s10, 4096  ;;  %p1755_p1 = scmp.lt.s32.totalorder %s16_s10, %s16_s10 }
   0x5   :  { %p1751_p0 = scmp.ne.s32.totalorder %s16_s10, %s1750_s11  ;;  %p1756_p2 = scmp.lt.s32.totalorder %s1750_s11, %s1750_s11 }
   0x7   :  { %p1757_p3 = por %p1756_p2, %p1755_p1 }
   0x9   :  { %p1758_p4 = pnand %p1757_p3, %p1751_p0 }
   0xb   :  { %1761 = shalt.err (!%p1758_p4)
}
   0xc   :  { %s1809_s12 = smov 512   ;;  %s1810_s13 = smov 32  }
   0xd   :  { %21 = dma.hbm_to_vmem [thread:$0]  %s2648_s0, 4096, %s16_s10, [#allocation3], %s1809_s12, %s1809_s12, %s1810_s13  }
   0xe   :  { %s1811_s16 = smov [#allocation5]  }
   0xf   :  { %s27_s17 = sshll.u32 %s1811_s16, 4  ;;  %s28_s17 = int_to_ptr.vmem [resolvable:$true] %s27_s17 }
  0x10   :  { %s1770_s18 = scalar_lea.vmem %s28_s17, 8192  ;;  %p1775_p6 = scmp.lt.s32.totalorder %s28_s17, %s28_s17 }
  0x11   :  { %p1771_p5 = scmp.ne.s32.totalorder %s28_s17, %s1770_s18  ;;  %p1776_p7 = scmp.lt.s32.totalorder %s1770_s18, %s1770_s18 }
  0x13   :  { %p1777_p8 = por %p1776_p7, %p1775_p6 }
  0x15   :  { %p1778_p9 = pnand %p1777_p8, %p1771_p5 }
  0x17   :  { %1781 = shalt.err (!%p1778_p9)
}
  0x18   :  { %33 = dma.hbm_to_vmem [thread:$0]  %s2649_s1, 8192, %s28_s17, [#allocation6], %s1809_s12, %s1809_s12, %s1810_s13  }
  0x19   :  { %1802 = dma.done.wait [#allocation3], 4096  }
  0x1a   :  { %1803 = vsyncadd [#allocation3], 4294963200 }
  0x1b   :  { %1804 = dma.done.wait [#allocation6], 8192  }
  0x1c   :  { %1805 = vsyncadd [#allocation6], 4294959104  ;;  %v2653_v0 = vmov 0.0   ;;  %v1837_v1 = vld [vmem:[#allocation5 + $0x1e8] sm:$0xff]  ;;  %v1839_v2 = vld [vmem:[#allocation5 + $0x1e0] sm:$0xff]  ;;  %s1813_s0 = smov [#allocation7]  }
  0x1d   :  { %172 = vmatprep.mubr.f32.mxu0 %v2653_v0  ;;  %243 = vmatprep.mubr.f32.mxu1 %v2653_v0  ;;  %2720 = vst [vmem:[#allocation11_spill] sm:$0xff] %v1837_v1  ;;  %v1841_v3 = vld [vmem:[#allocation5 + $0x1c8] sm:$0xff]  ;;  %v1844_v4 = vld [vmem:[#allocation5 + $0x1c0] sm:$0xff]  ;;  %v1858_v9 = vld [vmem:[#allocation5 + $0x1f8] sm:$0xff]  ;;  %s1510_s1 = sshll.u32 %s1813_s0, 4  ;;  %s1511_s1 = int_to_ptr.vmem [resolvable:$true] %s1510_s1 }
  0x1e   :  { %108 = vmatprep.subr.mxu0 %v1837_v1  ;;  %v1847_v5 = vld [vmem:[#allocation5 + $0x1a8] sm:$0xff]  ;;  %v1850_v6 = vld [vmem:[#allocation5 + $0x1a0] sm:$0xff]  ;;  %2721 = vst [vmem:[#allocation12_spill] sm:$0xff] %v1858_v9  ;;  %179 = vmatprep.subr.mxu1 %v1858_v9  ;;  %v1864_v11 = vld [vmem:[#allocation5 + $0x1f0] sm:$0xff]  ;;  %s1782_s21 = scalar_lea.vmem %s1511_s1, 128  ;;  %p1787_p11 = scmp.lt.s32.totalorder %s1511_s1, %s1511_s1 }
  0x1f   :  { %109 = vmatpush1.msra.mxu0 %v1839_v2  ;;  %v1853_v7 = vld [vmem:[#allocation5 + $0x188] sm:$0xff]  ;;  %v1856_v8 = vld [vmem:[#allocation5 + $0x180] sm:$0xff]  ;;  %180 = vmatpush1.msra.mxu1 %v1864_v11  ;;  %v1870_v13 = vld [vmem:[#allocation5 + $0x1d8] sm:$0xff]  ;;  %p1783_p10 = scmp.ne.s32.totalorder %s1511_s1, %s1782_s21  ;;  %p1788_p12 = scmp.lt.s32.totalorder %s1782_s21, %s1782_s21 }
  0x20   :  { %110 = vmatprep.subr.mxu0 %v1841_v3  ;;  %v1861_v10 = vld [vmem:[#allocation5 + $0x168] sm:$0xff]  ;;  %v1867_v12 = vld [vmem:[#allocation5 + $0x160] sm:$0xff]  ;;  %v1872_v14 = vld [vmem:[#allocation5 + $0x1d0] sm:$0xff]  ;;  %181 = vmatprep.subr.mxu1 %v1870_v13 }
  0x21   :  { %111 = vmatpush1.msra.mxu0 %v1844_v4  ;;  %v1875_v15 = vld [vmem:[#allocation5 + $0x148] sm:$0xff]  ;;  %v1878_v16 = vld [vmem:[#allocation5 + $0x1b8] sm:$0xff]  ;;  %v1881_v17 = vld [vmem:[#allocation5 + $0x140] sm:$0xff]  ;;  %182 = vmatpush1.msra.mxu1 %v1872_v14  ;;  %p1789_p13 = por %p1788_p12, %p1787_p11 }
  0x22   :  { %112 = vmatprep.subr.mxu0 %v1847_v5  ;;  %v1884_v18 = vld [vmem:[#allocation5 + $0x1b0] sm:$0xff]  ;;  %v1886_v19 = vld [vmem:[#allocation5 + $0x198] sm:$0xff]  ;;  %v1889_v20 = vld [vmem:[#allocation5 + $0x128] sm:$0xff]  ;;  %183 = vmatprep.subr.mxu1 %v1878_v16 }
  0x23   :  { %113 = vmatpush1.msra.mxu0 %v1850_v6  ;;  %v1892_v21 = vld [vmem:[#allocation5 + $0x190] sm:$0xff]  ;;  %v1895_v22 = vld [vmem:[#allocation5 + $0x120] sm:$0xff]  ;;  %184 = vmatpush1.msra.mxu1 %v1884_v18  ;;  %v1898_v23 = vld [vmem:[#allocation5 + $0x178] sm:$0xff]  ;;  %p1790_p0 = pnand %p1789_p13, %p1783_p10 }
  0x24   :  { %114 = vmatprep.subr.mxu0 %v1853_v7  ;;  %v1901_v24 = vld [vmem:[#allocation5 + $0x108] sm:$0xff]  ;;  %185 = vmatprep.subr.mxu1 %v1886_v19  ;;  %v1904_v25 = vld [vmem:[#allocation5 + $0x170] sm:$0xff]  ;;  %v1907_v26 = vld [vmem:[#allocation5 + $0x100] sm:$0xff] }
  0x25   :  { %115 = vmatpush1.msra.mxu0 %v1856_v8  ;;  %186 = vmatpush1.msra.mxu1 %v1892_v21  ;;  %v1910_v27 = vld [vmem:[#allocation5 + $0x158] sm:$0xff]  ;;  %v1913_v28 = vld [vmem:[#allocation5 + $0xe8] sm:$0xff]  ;;  %v1916_v29 = vld [vmem:[#allocation5 + $0x150] sm:$0xff] }
  0x26   :  { %116 = vmatprep.subr.mxu0 %v1861_v10  ;;  %187 = vmatprep.subr.mxu1 %v1898_v23  ;;  %v1919_v30 = vld [vmem:[#allocation5 + $0xe0] sm:$0xff]  ;;  %v1922_v31 = vld [vmem:[#allocation5 + $0x138] sm:$0xff]  ;;  %v1925_v32 = vld [vmem:[#allocation5 + $0xc8] sm:$0xff] }
  0x27   :  { %117 = vmatpush1.msra.mxu0 %v1867_v12  ;;  %188 = vmatpush1.msra.mxu1 %v1904_v25  ;;  %v1928_v33 = vld [vmem:[#allocation5 + $0x130] sm:$0xff]  ;;  %v1931_v34 = vld [vmem:[#allocation5 + $0xc0] sm:$0xff]  ;;  %v1934_v35 = vld [vmem:[#allocation5 + $0x118] sm:$0xff] }
  0x28   :  { %118 = vmatprep.subr.mxu0 %v1875_v15  ;;  %189 = vmatprep.subr.mxu1 %v1910_v27  ;;  %v1937_v36 = vld [vmem:[#allocation5 + $0xa8] sm:$0xff]  ;;  %v1940_v37 = vld [vmem:[#allocation5 + $0x110] sm:$0xff]  ;;  %v1943_v38 = vld [vmem:[#allocation5 + $0xa0] sm:$0xff] }
  0x29   :  { %119 = vmatpush1.msra.mxu0 %v1881_v17  ;;  %190 = vmatpush1.msra.mxu1 %v1916_v29  ;;  %v1946_v39 = vld [vmem:[#allocation5 + $0xf8] sm:$0xff]  ;;  %v1949_v40 = vld [vmem:[#allocation5 + $0x88] sm:$0xff]  ;;  %v1952_v41 = vld [vmem:[#allocation5 + $0xf0] sm:$0xff] }
  0x2a   :  { %120 = vmatprep.subr.mxu0 %v1889_v20  ;;  %191 = vmatprep.subr.mxu1 %v1922_v31  ;;  %v1955_v42 = vld [vmem:[#allocation5 + $0x80] sm:$0xff]  ;;  %v1958_v43 = vld [vmem:[#allocation5 + $0xd8] sm:$0xff]  ;;  %v1961_v44 = vld [vmem:[#allocation5 + $0x68] sm:$0xff] }
  0x2b   :  { %121 = vmatpush1.msra.mxu0 %v1895_v22  ;;  %192 = vmatpush1.msra.mxu1 %v1928_v33  ;;  %2722 = vst [vmem:[#allocation13_spill] sm:$0xff] %v1955_v42  ;;  %2723 = vst [vmem:[#allocation14_spill] sm:$0xff] %v1961_v44  ;;  %v1964_v45 = vld [vmem:[#allocation5 + $0xd0] sm:$0xff]  ;;  %v1967_v46 = vld [vmem:[#allocation5 + $0x60] sm:$0xff] }
  0x2c   :  { %122 = vmatprep.subr.mxu0 %v1901_v24  ;;  %193 = vmatprep.subr.mxu1 %v1934_v35  ;;  %2724 = vst [vmem:[#allocation15_spill] sm:$0xff] %v1967_v46  ;;  %v1970_v47 = vld [vmem:[#allocation5 + $0xb8] sm:$0xff]  ;;  %v1973_v48 = vld [vmem:[#allocation5 + $0x48] sm:$0xff]  ;;  %v1976_v49 = vld [vmem:[#allocation5 + $0xb0] sm:$0xff] }
  0x2d   :  { %123 = vmatpush1.msra.mxu0 %v1907_v26  ;;  %194 = vmatpush1.msra.mxu1 %v1940_v37  ;;  %2725 = vst [vmem:[#allocation16_spill] sm:$0xff] %v1973_v48  ;;  %v1979_v50 = vld [vmem:[#allocation5 + $0x40] sm:$0xff]  ;;  %v1982_v51 = vld [vmem:[#allocation5 + $0x98] sm:$0xff]  ;;  %v1985_v52 = vld [vmem:[#allocation5 + $0x28] sm:$0xff] }
  0x2e   :  { %124 = vmatprep.subr.mxu0 %v1913_v28  ;;  %195 = vmatprep.subr.mxu1 %v1946_v39  ;;  %2726 = vst [vmem:[#allocation17_spill] sm:$0xff] %v1979_v50  ;;  %2727 = vst [vmem:[#allocation18_spill] sm:$0xff] %v1985_v52  ;;  %v1988_v53 = vld [vmem:[#allocation5 + $0x90] sm:$0xff]  ;;  %v1991_v54 = vld [vmem:[#allocation5 + $0x20] sm:$0xff] }
  0x2f   :  { %125 = vmatpush1.msra.mxu0 %v1919_v30  ;;  %196 = vmatpush1.msra.mxu1 %v1952_v41  ;;  %2728 = vst [vmem:[#allocation19_spill] sm:$0xff] %v1988_v53  ;;  %2729 = vst [vmem:[#allocation20_spill] sm:$0xff] %v1991_v54  ;;  %v1994_v55 = vld [vmem:[#allocation5 + $0x78] sm:$0xff]  ;;  %v1997_v56 = vld [vmem:[#allocation5 + $0x8] sm:$0xff] }
  0x30   :  { %126 = vmatprep.subr.mxu0 %v1925_v32  ;;  %197 = vmatprep.subr.mxu1 %v1958_v43  ;;  %2730 = vst [vmem:[#allocation21_spill] sm:$0xff] %v1994_v55  ;;  %2731 = vst [vmem:[#allocation22_spill] sm:$0xff] %v1997_v56  ;;  %v2000_v57 = vld [vmem:[#allocation5 + $0x70] sm:$0xff]  ;;  %v2003_v58 = vld [vmem:[#allocation5] sm:$0xff] }
  0x31   :  { %127 = vmatpush1.msra.mxu0 %v1931_v34  ;;  %198 = vmatpush1.msra.mxu1 %v1964_v45  ;;  %2732 = vst [vmem:[#allocation23_spill] sm:$0xff] %v2000_v57  ;;  %2733 = vst [vmem:[#allocation24_spill] sm:$0xff] %v2003_v58  ;;  %v2006_v59 = vld [vmem:[#allocation5 + $0x58] sm:$0xff]  ;;  %v2010_v60 = vld [vmem:[#allocation5 + $0x50] sm:$0xff] }
  0x32   :  { %128 = vmatprep.subr.mxu0 %v1937_v36  ;;  %199 = vmatprep.subr.mxu1 %v1970_v47  ;;  %2734 = vst [vmem:[#allocation25_spill] sm:$0xff] %v2006_v59  ;;  %2735 = vst [vmem:[#allocation26_spill] sm:$0xff] %v2010_v60  ;;  %v2014_v61 = vld [vmem:[#allocation5 + $0x38] sm:$0xff]  ;;  %v2018_v62 = vld [vmem:[#allocation5 + $0x30] sm:$0xff] }
  0x33   :  { %129 = vmatpush1.msra.mxu0 %v1943_v38  ;;  %200 = vmatpush1.msra.mxu1 %v1976_v49  ;;  %2736 = vst [vmem:[#allocation27_spill] sm:$0xff] %v2014_v61  ;;  %2737 = vst [vmem:[#allocation28_spill] sm:$0xff] %v2018_v62  ;;  %v2022_v63 = vld [vmem:[#allocation5 + $0x18] sm:$0xff] }
  0x34   :  { %130 = vmatprep.subr.mxu0 %v1949_v40  ;;  %201 = vmatprep.subr.mxu1 %v1982_v51  ;;  %2738 = vst [vmem:[#allocation29_spill] sm:$0xff] %v2022_v63 }
  0x35   :  { %131 = vmatpush1.msra.mxu0 %v1955_v42  ;;  %202 = vmatpush1.msra.mxu1 %v1988_v53 }
  0x36   :  { %132 = vmatprep.subr.mxu0 %v1961_v44  ;;  %203 = vmatprep.subr.mxu1 %v1994_v55 }
  0x37   :  { %133 = vmatpush1.msra.mxu0 %v1967_v46  ;;  %204 = vmatpush1.msra.mxu1 %v2000_v57 }
  0x38   :  { %134 = vmatprep.subr.mxu0 %v1973_v48  ;;  %205 = vmatprep.subr.mxu1 %v2006_v59 }
  0x39   :  { %135 = vmatpush1.msra.mxu0 %v1979_v50  ;;  %206 = vmatpush1.msra.mxu1 %v2010_v60 }
  0x3a   :  { %136 = vmatprep.subr.mxu0 %v1985_v52  ;;  %207 = vmatprep.subr.mxu1 %v2014_v61 }
  0x3b   :  { %137 = vmatpush1.msra.mxu0 %v1991_v54  ;;  %v2025_v54 = vld [vmem:[#allocation5 + $0x10] sm:$0xff]  ;;  %208 = vmatpush1.msra.mxu1 %v2018_v62 }
  0x3c   :  { %138 = vmatprep.subr.mxu0 %v1997_v56  ;;  %2739 = vst [vmem:[#allocation30_spill] sm:$0xff] %v2025_v54  ;;  %209 = vmatprep.subr.mxu1 %v2022_v63 }
  0x3d   :  { %139 = vmatpush1.msra.mxu0 %v2003_v58  ;;  %210 = vmatpush1.msra.mxu1 %v2025_v54 }
  0x3e   :  { %173 = vmatmul.mubr.f32.vlgmr.msra.gmra.mxu0 %v2653_v0  ;;  %283 = vmatprep.subr.mxu0 %v1837_v1 }
  0x3f   :  { %284 = vmatpush1.msra.mxu0 %v1839_v2  ;;  %244 = vmatmul.mubr.f32.vlgmr.msra.gmra.mxu1 %v2653_v0  ;;  %v2740_v0 = vld [vmem:[#allocation20_spill] sm:$0xff] }
  0x40   :  { %285 = vmatprep.subr.mxu0 %v1841_v3  ;;  %354 = vmatprep.subr.mxu1 %v1858_v9 }
  0x41   :  { %286 = vmatpush1.msra.mxu0 %v1844_v4  ;;  %355 = vmatpush1.msra.mxu1 %v1864_v11 }
  0x42   :  { %287 = vmatprep.subr.mxu0 %v1847_v5  ;;  %356 = vmatprep.subr.mxu1 %v1870_v13 }
  0x43   :  { %288 = vmatpush1.msra.mxu0 %v1850_v6  ;;  %357 = vmatpush1.msra.mxu1 %v1872_v14 }
  0x44   :  { %289 = vmatprep.subr.mxu0 %v1853_v7  ;;  %358 = vmatprep.subr.mxu1 %v1878_v16 }
  0x45   :  { %290 = vmatpush1.msra.mxu0 %v1856_v8  ;;  %359 = vmatpush1.msra.mxu1 %v1884_v18 }
  0x46   :  { %291 = vmatprep.subr.mxu0 %v1861_v10  ;;  %360 = vmatprep.subr.mxu1 %v1886_v19 }
  0x47   :  { %292 = vmatpush1.msra.mxu0 %v1867_v12  ;;  %361 = vmatpush1.msra.mxu1 %v1892_v21 }
  0x48   :  { %293 = vmatprep.subr.mxu0 %v1875_v15  ;;  %362 = vmatprep.subr.mxu1 %v1898_v23 }
  0x49   :  { %294 = vmatpush1.msra.mxu0 %v1881_v17  ;;  %363 = vmatpush1.msra.mxu1 %v1904_v25 }
  0x4a   :  { %295 = vmatprep.subr.mxu0 %v1889_v20  ;;  %364 = vmatprep.subr.mxu1 %v1910_v27 }
  0x4b   :  { %296 = vmatpush1.msra.mxu0 %v1895_v22  ;;  %365 = vmatpush1.msra.mxu1 %v1916_v29 }
  0x4c   :  { %297 = vmatprep.subr.mxu0 %v1901_v24  ;;  %366 = vmatprep.subr.mxu1 %v1922_v31 }
  0x4d   :  { %298 = vmatpush1.msra.mxu0 %v1907_v26  ;;  %367 = vmatpush1.msra.mxu1 %v1928_v33 }
  0x4e   :  { %299 = vmatprep.subr.mxu0 %v1913_v28  ;;  %368 = vmatprep.subr.mxu1 %v1934_v35 }
  0x4f   :  { %300 = vmatpush1.msra.mxu0 %v1919_v30  ;;  %369 = vmatpush1.msra.mxu1 %v1940_v37 }
  0x50   :  { %301 = vmatprep.subr.mxu0 %v1925_v32  ;;  %370 = vmatprep.subr.mxu1 %v1946_v39 }
  0x51   :  { %302 = vmatpush1.msra.mxu0 %v1931_v34  ;;  %371 = vmatpush1.msra.mxu1 %v1952_v41 }
  0x52   :  { %303 = vmatprep.subr.mxu0 %v1937_v36  ;;  %372 = vmatprep.subr.mxu1 %v1958_v43 }
  0x53   :  { %304 = vmatpush1.msra.mxu0 %v1943_v38  ;;  %373 = vmatpush1.msra.mxu1 %v1964_v45 }
  0x54   :  { %305 = vmatprep.subr.mxu0 %v1949_v40  ;;  %374 = vmatprep.subr.mxu1 %v1970_v47 }
  0x55   :  { %306 = vmatpush1.msra.mxu0 %v1955_v42  ;;  %375 = vmatpush1.msra.mxu1 %v1976_v49 }
  0x56   :  { %307 = vmatprep.subr.mxu0 %v1961_v44  ;;  %376 = vmatprep.subr.mxu1 %v1982_v51 }
  0x57   :  { %308 = vmatpush1.msra.mxu0 %v1967_v46  ;;  %377 = vmatpush1.msra.mxu1 %v1988_v53 }
  0x58   :  { %309 = vmatprep.subr.mxu0 %v1973_v48  ;;  %378 = vmatprep.subr.mxu1 %v1994_v55  ;;  %v2741_v48 = vmov 0.0  }
  0x59   :  { %310 = vmatpush1.msra.mxu0 %v1979_v50  ;;  %379 = vmatpush1.msra.mxu1 %v2000_v57 }
  0x5a   :  { %311 = vmatprep.subr.mxu0 %v1985_v52  ;;  %380 = vmatprep.subr.mxu1 %v2006_v59  ;;  %v105_v52 = vld [vmem:[#allocation2 + $0x8] sm:$0xff] }
  0x5b   :  { %312 = vmatpush1.msra.mxu0 %v2740_v0  ;;  %381 = vmatpush1.msra.mxu1 %v2010_v60  ;;  %v104_v0 = vld [vmem:[#allocation2] sm:$0xff] }
  0x5c   :  { %313 = vmatprep.subr.mxu0 %v1997_v56  ;;  %382 = vmatprep.subr.mxu1 %v2014_v61 }
  0x5d   :  { %314 = vmatpush1.msra.mxu0 %v2003_v58  ;;  %383 = vmatpush1.msra.mxu1 %v2018_v62 }
  0x5e   :  { %347 = vmatprep.mubr.f32.mxu0 %v2741_v48  ;;  %384 = vmatprep.subr.mxu1 %v2022_v63  ;;  %v107_v63 = vld [vmem:[#allocation2 + $0x18] sm:$0xff] }
  0x5f   :  { %418 = vmatprep.mubr.f32.mxu1 %v2741_v48  ;;  %385 = vmatpush1.msra.mxu1 %v2025_v54  ;;  %v106_v48 = vld [vmem:[#allocation2 + $0x10] sm:$0xff] }
  0x60   :  { %458 = vmatprep.subr.mxu0 %v1837_v1  ;;  %529 = vmatprep.subr.mxu1 %v1858_v9 }
  0xfe   :  { %v174_v56 = vpop.f32.mrf.mxu0 }
  0xff   :  { %v250_v61 = vadd.f32 %v174_v56, %v104_v0  ;;  %v245_v59 = vpop.f32.mrf.mxu1 }
 0x100   :  { %v176_v60 = vpop.f32.mrf.mxu0  ;;  %v252_v54 = vadd.f32 %v245_v59, %v106_v48  ;;  %v2747_v59 = vld [vmem:[#allocation16_spill] sm:$0xff] }
 0x101   :  { %v1520_v58 = vmul.f32 -1.442695, %v250_v61  ;;  %v251_v50 = vadd.f32 %v176_v60, %v105_v52  ;;  %v247_v57 = vpop.f32.mrf.mxu1 }
 0x102   :  { %v253_v46 = vadd.f32 %v247_v57, %v107_v63  ;;  %v2746_v57 = vld [vmem:[#allocation23_spill] sm:$0xff]  ;;  %v2748_v63 = vld [vmem:[#allocation25_spill] sm:$0xff] }
 0x103   :  { %1550 = vpow2.f32 %v1520_v58  ;;  %v1521_v62 = vmul.f32 -1.442695, %v251_v50 }
 0x104   :  { %v1522_v55 = vmul.f32 -1.442695, %v253_v46 }
 0x105   :  { %1552 = vpow2.f32 %v1521_v62 }
 0x106   :  { %1554 = vtanh.f32 %v252_v54  ;;  %v2744_v54 = vld [vmem:[#allocation21_spill] sm:$0xff] }
 0x107   :  { %1556 = vpow2.f32 %v1522_v55  ;;  %v2745_v55 = vld [vmem:[#allocation15_spill] sm:$0xff] }
 0x110   :  { %v1551_v1 = vpop.eup %1550 }
 0x111   :  { %v257_v44 = vadd.f32 1.0, %v1551_v1 }
 0x112   :  { %v1553_v9 = vpop.eup %1552 }
 0x113   :  { %1558 = vrcp.f32 %v257_v44  ;;  %v263_v0 = vadd.f32 1.0, %v1553_v9  ;;  %v1555_v56 = vpop.eup %1554  ;;  %v2742_v9 = vld [vmem:[#allocation19_spill] sm:$0xff]  ;;  %v2743_v44 = vld [vmem:[#allocation14_spill] sm:$0xff] }
 0x114   :  { %v1557_v52 = vpop.eup %1556 }
 0x115   :  { %1560 = vrcp.f32 %v263_v0  ;;  %v270_v60 = vadd.f32 1.0, %v1557_v52  ;;  %v2749_v0 = vld [vmem:[#allocation17_spill] sm:$0xff]  ;;  %v2751_v52 = vld [vmem:[#allocation18_spill] sm:$0xff] }
 0x117   :  { %1562 = vrcp.f32 %v270_v60  ;;  %v2754_v60 = vld [vmem:[#allocation28_spill] sm:$0xff] }
 0x120   :  { %v1559_v58 = vpop.eup %1558 }
 0x121   :  { %v274_v62 = vmul.f32 %v1559_v58, %v1555_v56  ;;  %v2750_v56 = vld [vmem:[#allocation26_spill] sm:$0xff]  ;;  %v2752_v58 = vld [vmem:[#allocation27_spill] sm:$0xff] }
 0x122   :  { %v1561_v50 = vpop.eup %1560 }
 0x123   :  { %v273_v61 = vmul.f32 0.0, %v1561_v50  ;;  %v2753_v50 = vld [vmem:[#allocation20_spill] sm:$0xff] }
 0x124   :  { %v1563_v46 = vpop.eup %1562 }
 0x125   :  { %v2099_v53 = vadd.f32 %v274_v62, %v273_v61  ;;  %v2755_v61 = vld [vmem:[#allocation22_spill] sm:$0xff]  ;;  %v2756_v62 = vld [vmem:[#allocation29_spill] sm:$0xff] }
 0x127   :  { %1564 = vtanh.f32 %v2099_v53 }
 0x134   :  { %v1565_v1 = vpop.eup %1564 }
 0x135   :  { %v277_v48 = vmul.f32 %v1565_v1, %v1563_v46  ;;  %v2757_v46 = vld [vmem:[#allocation24_spill] sm:$0xff]  ;;  %v2758_v1 = vmov 0.0  }
 0x137   :  { %348 = vmatmul.mubr.f32.vlgmr.msra.gmra.mxu0 %v277_v48  ;;  %419 = vmatmul.mubr.f32.vlgmr.msra.gmra.mxu1 %v277_v48  ;;  %v2759_v48 = vld [vmem:[#allocation30_spill] sm:$0xff] }
 0x138   :  { %459 = vmatpush1.msra.mxu0 %v1839_v2  ;;  %530 = vmatpush1.msra.mxu1 %v1864_v11 }
 0x139   :  { %460 = vmatprep.subr.mxu0 %v1841_v3  ;;  %531 = vmatprep.subr.mxu1 %v1870_v13 }
 0x13a   :  { %461 = vmatpush1.msra.mxu0 %v1844_v4  ;;  %532 = vmatpush1.msra.mxu1 %v1872_v14 }
 0x13b   :  { %462 = vmatprep.subr.mxu0 %v1847_v5  ;;  %533 = vmatprep.subr.mxu1 %v1878_v16 }
 0x13c   :  { %463 = vmatpush1.msra.mxu0 %v1850_v6  ;;  %534 = vmatpush1.msra.mxu1 %v1884_v18 }
 0x13d   :  { %464 = vmatprep.subr.mxu0 %v1853_v7  ;;  %535 = vmatprep.subr.mxu1 %v1886_v19 }
 0x13e   :  { %465 = vmatpush1.msra.mxu0 %v1856_v8  ;;  %536 = vmatpush1.msra.mxu1 %v1892_v21 }
 0x13f   :  { %466 = vmatprep.subr.mxu0 %v1861_v10  ;;  %537 = vmatprep.subr.mxu1 %v1898_v23 }
 0x140   :  { %467 = vmatpush1.msra.mxu0 %v1867_v12  ;;  %538 = vmatpush1.msra.mxu1 %v1904_v25 }
 0x141   :  { %468 = vmatprep.subr.mxu0 %v1875_v15  ;;  %539 = vmatprep.subr.mxu1 %v1910_v27 }
 0x142   :  { %469 = vmatpush1.msra.mxu0 %v1881_v17  ;;  %540 = vmatpush1.msra.mxu1 %v1916_v29 }
 0x143   :  { %470 = vmatprep.subr.mxu0 %v1889_v20  ;;  %541 = vmatprep.subr.mxu1 %v1922_v31 }
 0x144   :  { %471 = vmatpush1.msra.mxu0 %v1895_v22  ;;  %542 = vmatpush1.msra.mxu1 %v1928_v33 }
 0x145   :  { %472 = vmatprep.subr.mxu0 %v1901_v24  ;;  %543 = vmatprep.subr.mxu1 %v1934_v35 }
 0x146   :  { %473 = vmatpush1.msra.mxu0 %v1907_v26  ;;  %544 = vmatpush1.msra.mxu1 %v1940_v37 }
 0x147   :  { %474 = vmatprep.subr.mxu0 %v1913_v28  ;;  %545 = vmatprep.subr.mxu1 %v1946_v39 }
 0x148   :  { %475 = vmatpush1.msra.mxu0 %v1919_v30  ;;  %546 = vmatpush1.msra.mxu1 %v1952_v41 }
 0x149   :  { %476 = vmatprep.subr.mxu0 %v1925_v32  ;;  %547 = vmatprep.subr.mxu1 %v1958_v43 }
 0x14a   :  { %477 = vmatpush1.msra.mxu0 %v1931_v34  ;;  %548 = vmatpush1.msra.mxu1 %v1964_v45 }
 0x14b   :  { %478 = vmatprep.subr.mxu0 %v1937_v36  ;;  %549 = vmatprep.subr.mxu1 %v1970_v47 }
 0x14c   :  { %479 = vmatpush1.msra.mxu0 %v1943_v38  ;;  %550 = vmatpush1.msra.mxu1 %v1976_v49 }
 0x14d   :  { %480 = vmatprep.subr.mxu0 %v1949_v40  ;;  %551 = vmatprep.subr.mxu1 %v1982_v51 }
 0x14e   :  { %481 = vmatpush1.msra.mxu0 %v1955_v42  ;;  %552 = vmatpush1.msra.mxu1 %v2742_v9 }
 0x14f   :  { %482 = vmatprep.subr.mxu0 %v2743_v44  ;;  %553 = vmatprep.subr.mxu1 %v2744_v54  ;;  %v281_v54 = vld [vmem:[#allocation2 + $0x30] sm:$0xff] }
 0x150   :  { %483 = vmatpush1.msra.mxu0 %v2745_v55  ;;  %554 = vmatpush1.msra.mxu1 %v2746_v57  ;;  %v282_v57 = vld [vmem:[#allocation2 + $0x38] sm:$0xff] }
 0x151   :  { %484 = vmatprep.subr.mxu0 %v2747_v59  ;;  %555 = vmatprep.subr.mxu1 %v2748_v63 }
 0x152   :  { %485 = vmatpush1.msra.mxu0 %v2749_v0  ;;  %556 = vmatpush1.msra.mxu1 %v2750_v56  ;;  %v2760_v56 = vld [vmem:[#allocation11_spill] sm:$0xff] }
 0x153   :  { %486 = vmatprep.subr.mxu0 %v2751_v52  ;;  %557 = vmatprep.subr.mxu1 %v2752_v58  ;;  %v2761_v52 = vld [vmem:[#allocation12_spill] sm:$0xff]  ;;  %v279_v58 = vld [vmem:[#allocation2 + $0x20] sm:$0xff]  ;;  %v280_v0 = vld [vmem:[#allocation2 + $0x28] sm:$0xff] }
 0x154   :  { %487 = vmatpush1.msra.mxu0 %v2753_v50  ;;  %558 = vmatpush1.msra.mxu1 %v2754_v60 }
 0x155   :  { %488 = vmatprep.subr.mxu0 %v2755_v61  ;;  %559 = vmatprep.subr.mxu1 %v2756_v62 }
 0x156   :  { %489 = vmatpush1.msra.mxu0 %v2757_v46  ;;  %522 = vmatprep.mubr.f32.mxu0 %v2758_v1 }
 0x157   :  { %560 = vmatpush1.msra.mxu1 %v2759_v48  ;;  %593 = vmatprep.mubr.f32.mxu1 %v2758_v1 }
 0x158   :  { %633 = vmatprep.subr.mxu0 %v2760_v56  ;;  %704 = vmatprep.subr.mxu1 %v2761_v52 }
 0x1f7   :  { %v349_v50 = vpop.f32.mrf.mxu0  ;;  %v420_v62 = vpop.f32.mrf.mxu1 }
 0x1f8   :  { %v425_v60 = vadd.f32 %v349_v50, %v279_v58  ;;  %v427_v56 = vadd.f32 %v420_v62, %v281_v54  ;;  %v2767_v62 = vld [vmem:[#allocation23_spill] sm:$0xff] }
 0x1f9   :  { %v351_v63 = vpop.f32.mrf.mxu0  ;;  %v422_v55 = vpop.f32.mrf.mxu1 }
 0x1fa   :  { %v1523_v61 = vmul.f32 -1.442695, %v425_v60  ;;  %v426_v59 = vadd.f32 %v351_v63, %v280_v0  ;;  %v428_v48 = vadd.f32 %v422_v55, %v282_v57 }
 0x1fc   :  { %1566 = vpow2.f32 %v1523_v61  ;;  %v1524_v46 = vmul.f32 -1.442695, %v426_v59  ;;  %v1525_v1 = vmul.f32 -1.442695, %v428_v48  ;;  %v2770_v48 = vld [vmem:[#allocation17_spill] sm:$0xff] }
 0x1fe   :  { %1568 = vpow2.f32 %v1524_v46  ;;  %v2768_v46 = vld [vmem:[#allocation16_spill] sm:$0xff] }
 0x1ff   :  { %1570 = vpow2.f32 %v1525_v1  ;;  %v2769_v1 = vld [vmem:[#allocation25_spill] sm:$0xff] }
 0x209   :  { %v1567_v44 = vpop.eup %1566 }
 0x20a   :  { %v432_v9 = vadd.f32 1.0, %v1567_v44 }
 0x20b   :  { %v1569_v52 = vpop.eup %1568 }
 0x20c   :  { %1572 = vrcp.f32 %v432_v9  ;;  %v438_v42 = vadd.f32 1.0, %v1569_v52  ;;  %v1571_v58 = vpop.eup %1570  ;;  %v2764_v9 = vld [vmem:[#allocation14_spill] sm:$0xff]  ;;  %v2766_v52 = vld [vmem:[#allocation15_spill] sm:$0xff] }
 0x20d   :  { %1574 = vtanh.f32 %v427_v56  ;;  %v445_v59 = vadd.f32 1.0, %v1571_v58  ;;  %v2765_v56 = vld [vmem:[#allocation21_spill] sm:$0xff]  ;;  %v2771_v58 = vld [vmem:[#allocation26_spill] sm:$0xff] }
 0x20e   :  { %1576 = vrcp.f32 %v438_v42  ;;  %v2762_v42 = vld [vmem:[#allocation13_spill] sm:$0xff] }
 0x20f   :  { %1578 = vrcp.f32 %v445_v59  ;;  %v2775_v59 = vld [vmem:[#allocation28_spill] sm:$0xff] }
 0x219   :  { %v1573_v63 = vpop.eup %1572 }
 0x21a   :  { %v1575_v0 = vpop.eup %1574 }
 0x21b   :  { %v1577_v50 = vpop.eup %1576  ;;  %v449_v60 = vmul.f32 %v1575_v0, %v1573_v63  ;;  %v2772_v63 = vld [vmem:[#allocation18_spill] sm:$0xff]  ;;  %v2773_v0 = vld [vmem:[#allocation27_spill] sm:$0xff] }
 0x21c   :  { %v448_v61 = vmul.f32 %v1577_v50, %v2099_v53  ;;  %v1579_v44 = vpop.eup %1578  ;;  %v2763_v53 = vld [vmem:[#allocation19_spill] sm:$0xff]  ;;  %v2774_v50 = vld [vmem:[#allocation20_spill] sm:$0xff] }
 0x21e   :  { %v2169_v55 = vadd.f32 %v449_v60, %v448_v61  ;;  %v2776_v60 = vld [vmem:[#allocation22_spill] sm:$0xff]  ;;  %v2777_v61 = vld [vmem:[#allocation29_spill] sm:$0xff] }
 0x220   :  { %1580 = vtanh.f32 %v2169_v55 }
 0x22d   :  { %v1581_v54 = vpop.eup %1580 }
 0x22e   :  { %v452_v57 = vmul.f32 %v1581_v54, %v1579_v44  ;;  %v2778_v44 = vld [vmem:[#allocation24_spill] sm:$0xff]  ;;  %v2779_v54 = vmov 0.0  }
 0x230   :  { %523 = vmatmul.mubr.f32.vlgmr.msra.gmra.mxu0 %v452_v57  ;;  %594 = vmatmul.mubr.f32.vlgmr.msra.gmra.mxu1 %v452_v57  ;;  %v2780_v57 = vld [vmem:[#allocation30_spill] sm:$0xff] }
 0x231   :  { %634 = vmatpush1.msra.mxu0 %v1839_v2  ;;  %705 = vmatpush1.msra.mxu1 %v1864_v11 }
 0x232   :  { %635 = vmatprep.subr.mxu0 %v1841_v3  ;;  %706 = vmatprep.subr.mxu1 %v1870_v13 }
 0x233   :  { %636 = vmatpush1.msra.mxu0 %v1844_v4  ;;  %707 = vmatpush1.msra.mxu1 %v1872_v14 }
 0x234   :  { %637 = vmatprep.subr.mxu0 %v1847_v5  ;;  %708 = vmatprep.subr.mxu1 %v1878_v16 }
 0x235   :  { %638 = vmatpush1.msra.mxu0 %v1850_v6  ;;  %709 = vmatpush1.msra.mxu1 %v1884_v18 }
 0x236   :  { %639 = vmatprep.subr.mxu0 %v1853_v7  ;;  %710 = vmatprep.subr.mxu1 %v1886_v19 }
 0x237   :  { %640 = vmatpush1.msra.mxu0 %v1856_v8  ;;  %711 = vmatpush1.msra.mxu1 %v1892_v21 }
 0x238   :  { %641 = vmatprep.subr.mxu0 %v1861_v10  ;;  %712 = vmatprep.subr.mxu1 %v1898_v23 }
 0x239   :  { %642 = vmatpush1.msra.mxu0 %v1867_v12  ;;  %713 = vmatpush1.msra.mxu1 %v1904_v25 }
 0x23a   :  { %643 = vmatprep.subr.mxu0 %v1875_v15  ;;  %714 = vmatprep.subr.mxu1 %v1910_v27 }
 0x23b   :  { %644 = vmatpush1.msra.mxu0 %v1881_v17  ;;  %715 = vmatpush1.msra.mxu1 %v1916_v29 }
 0x23c   :  { %645 = vmatprep.subr.mxu0 %v1889_v20  ;;  %716 = vmatprep.subr.mxu1 %v1922_v31 }
 0x23d   :  { %646 = vmatpush1.msra.mxu0 %v1895_v22  ;;  %717 = vmatpush1.msra.mxu1 %v1928_v33 }
 0x23e   :  { %647 = vmatprep.subr.mxu0 %v1901_v24  ;;  %718 = vmatprep.subr.mxu1 %v1934_v35 }
 0x23f   :  { %648 = vmatpush1.msra.mxu0 %v1907_v26  ;;  %719 = vmatpush1.msra.mxu1 %v1940_v37 }
 0x240   :  { %649 = vmatprep.subr.mxu0 %v1913_v28  ;;  %720 = vmatprep.subr.mxu1 %v1946_v39 }
 0x241   :  { %650 = vmatpush1.msra.mxu0 %v1919_v30  ;;  %721 = vmatpush1.msra.mxu1 %v1952_v41 }
 0x242   :  { %651 = vmatprep.subr.mxu0 %v1925_v32  ;;  %722 = vmatprep.subr.mxu1 %v1958_v43 }
 0x243   :  { %652 = vmatpush1.msra.mxu0 %v1931_v34  ;;  %723 = vmatpush1.msra.mxu1 %v1964_v45 }
 0x244   :  { %653 = vmatprep.subr.mxu0 %v1937_v36  ;;  %724 = vmatprep.subr.mxu1 %v1970_v47 }
 0x245   :  { %654 = vmatpush1.msra.mxu0 %v1943_v38  ;;  %725 = vmatpush1.msra.mxu1 %v1976_v49 }
 0x246   :  { %655 = vmatprep.subr.mxu0 %v1949_v40  ;;  %726 = vmatprep.subr.mxu1 %v1982_v51 }
 0x247   :  { %656 = vmatpush1.msra.mxu0 %v2762_v42  ;;  %727 = vmatpush1.msra.mxu1 %v2763_v53 }
 0x248   :  { %657 = vmatprep.subr.mxu0 %v2764_v9  ;;  %728 = vmatprep.subr.mxu1 %v2765_v56  ;;  %v456_v56 = vld [vmem:[#allocation2 + $0x50] sm:$0xff] }
 0x249   :  { %658 = vmatpush1.msra.mxu0 %v2766_v52  ;;  %729 = vmatpush1.msra.mxu1 %v2767_v62  ;;  %v457_v62 = vld [vmem:[#allocation2 + $0x58] sm:$0xff] }
 0x24a   :  { %659 = vmatprep.subr.mxu0 %v2768_v46  ;;  %730 = vmatprep.subr.mxu1 %v2769_v1 }
 0x24b   :  { %660 = vmatpush1.msra.mxu0 %v2770_v48  ;;  %731 = vmatpush1.msra.mxu1 %v2771_v58  ;;  %v2781_v58 = vld [vmem:[#allocation11_spill] sm:$0xff] }
 0x24c   :  { %661 = vmatprep.subr.mxu0 %v2772_v63  ;;  %732 = vmatprep.subr.mxu1 %v2773_v0  ;;  %v2782_v63 = vld [vmem:[#allocation12_spill] sm:$0xff]  ;;  %v454_v0 = vld [vmem:[#allocation2 + $0x40] sm:$0xff]  ;;  %v455_v48 = vld [vmem:[#allocation2 + $0x48] sm:$0xff] }
 0x24d   :  { %662 = vmatpush1.msra.mxu0 %v2774_v50  ;;  %733 = vmatpush1.msra.mxu1 %v2775_v59 }
 0x24e   :  { %663 = vmatprep.subr.mxu0 %v2776_v60  ;;  %734 = vmatprep.subr.mxu1 %v2777_v61 }
 0x24f   :  { %664 = vmatpush1.msra.mxu0 %v2778_v44  ;;  %697 = vmatprep.mubr.f32.mxu0 %v2779_v54 }
 0x250   :  { %735 = vmatpush1.msra.mxu1 %v2780_v57  ;;  %768 = vmatprep.mubr.f32.mxu1 %v2779_v54 }
 0x251   :  { %808 = vmatprep.subr.mxu0 %v2781_v58  ;;  %879 = vmatprep.subr.mxu1 %v2782_v63 }
 0x2f0   :  { %v524_v50 = vpop.f32.mrf.mxu0  ;;  %v595_v61 = vpop.f32.mrf.mxu1 }
 0x2f1   :  { %v600_v59 = vadd.f32 %v524_v50, %v454_v0  ;;  %v602_v58 = vadd.f32 %v595_v61, %v456_v56 }
 0x2f2   :  { %v526_v1 = vpop.f32.mrf.mxu0  ;;  %v597_v52 = vpop.f32.mrf.mxu1 }
 0x2f3   :  { %v1526_v60 = vmul.f32 -1.442695, %v600_v59  ;;  %v601_v46 = vadd.f32 %v526_v1, %v455_v48  ;;  %v603_v57 = vadd.f32 %v597_v52, %v457_v62 }
 0x2f5   :  { %1582 = vpow2.f32 %v1526_v60  ;;  %v1527_v44 = vmul.f32 -1.442695, %v601_v46  ;;  %v1528_v54 = vmul.f32 -1.442695, %v603_v57 }
 0x2f7   :  { %1584 = vpow2.f32 %v1527_v44 }
 0x2f8   :  { %1586 = vpow2.f32 %v1528_v54 }
 0x302   :  { %v1583_v9 = vpop.eup %1582 }
 0x303   :  { %v607_v53 = vadd.f32 1.0, %v1583_v9 }
 0x304   :  { %v1585_v63 = vpop.eup %1584 }
 0x305   :  { %1588 = vrcp.f32 %v607_v53  ;;  %v613_v42 = vadd.f32 1.0, %v1585_v63  ;;  %v1587_v0 = vpop.eup %1586 }
 0x306   :  { %1590 = vtanh.f32 %v602_v58  ;;  %v620_v46 = vadd.f32 1.0, %v1587_v0 }
 0x307   :  { %1592 = vrcp.f32 %v613_v42 }
 0x308   :  { %1594 = vrcp.f32 %v620_v46  ;;  %v2320_v46 = vld [vmem:[#allocation5 + $0x1c8] sm:$0xff] }
 0x312   :  { %v1589_v1 = vpop.eup %1588 }
 0x313   :  { %v1591_v48 = vpop.eup %1590 }
 0x314   :  { %v1593_v50 = vpop.eup %1592  ;;  %v624_v59 = vmul.f32 %v1591_v48, %v1589_v1  ;;  %v2314_v48 = vld [vmem:[#allocation5 + $0x1e0] sm:$0xff] }
 0x315   :  { %v623_v60 = vmul.f32 %v1593_v50, %v2169_v55  ;;  %v1595_v9 = vpop.eup %1594  ;;  %v2317_v50 = vld [vmem:[#allocation5 + $0x1f0] sm:$0xff] }
 0x317   :  { %v2239_v52 = vadd.f32 %v624_v59, %v623_v60  ;;  %v2323_v59 = vld [vmem:[#allocation5 + $0x1d8] sm:$0xff]  ;;  %v2326_v60 = vld [vmem:[#allocation5 + $0x1c0] sm:$0xff] }
 0x319   :  { %1596 = vtanh.f32 %v2239_v52 }
 0x326   :  { %v1597_v56 = vpop.eup %1596 }
 0x327   :  { %v627_v62 = vmul.f32 %v1597_v56, %v1595_v9  ;;  %v2332_v9 = vld [vmem:[#allocation5 + $0x1a8] sm:$0xff]  ;;  %v2335_v56 = vld [vmem:[#allocation5 + $0x1b8] sm:$0xff] }
 0x329   :  { %698 = vmatmul.mubr.f32.vlgmr.msra.gmra.mxu0 %v627_v62  ;;  %769 = vmatmul.mubr.f32.vlgmr.msra.gmra.mxu1 %v627_v62  ;;  %v2338_v62 = vld [vmem:[#allocation5 + $0x1a0] sm:$0xff] }
 0x32a   :  { %809 = vmatpush1.msra.mxu0 %v1839_v2  ;;  %880 = vmatpush1.msra.mxu1 %v1864_v11  ;;  %v2783_v2 = vld [vmem:[#allocation13_spill] sm:$0xff] }
 0x32b   :  { %810 = vmatprep.subr.mxu0 %v1841_v3  ;;  %881 = vmatprep.subr.mxu1 %v1870_v13  ;;  %v2784_v3 = vld [vmem:[#allocation19_spill] sm:$0xff]  ;;  %v2791_v11 = vld [vmem:[#allocation17_spill] sm:$0xff]  ;;  %v2793_v13 = vld [vmem:[#allocation18_spill] sm:$0xff] }
 0x32c   :  { %811 = vmatpush1.msra.mxu0 %v1844_v4  ;;  %882 = vmatpush1.msra.mxu1 %v1872_v14  ;;  %v2785_v4 = vld [vmem:[#allocation14_spill] sm:$0xff]  ;;  %v2794_v14 = vld [vmem:[#allocation27_spill] sm:$0xff] }
 0x32d   :  { %812 = vmatprep.subr.mxu0 %v1847_v5  ;;  %883 = vmatprep.subr.mxu1 %v1878_v16  ;;  %v2786_v5 = vld [vmem:[#allocation21_spill] sm:$0xff]  ;;  %v2796_v16 = vld [vmem:[#allocation28_spill] sm:$0xff] }
 0x32e   :  { %813 = vmatpush1.msra.mxu0 %v1850_v6  ;;  %884 = vmatpush1.msra.mxu1 %v1884_v18  ;;  %v2787_v6 = vld [vmem:[#allocation15_spill] sm:$0xff]  ;;  %v2798_v18 = vld [vmem:[#allocation29_spill] sm:$0xff] }
 0x32f   :  { %814 = vmatprep.subr.mxu0 %v1853_v7  ;;  %885 = vmatprep.subr.mxu1 %v1886_v19  ;;  %v2788_v7 = vld [vmem:[#allocation23_spill] sm:$0xff]  ;;  %v2799_v19 = vld [vmem:[#allocation24_spill] sm:$0xff] }
 0x330   :  { %815 = vmatpush1.msra.mxu0 %v1856_v8  ;;  %886 = vmatpush1.msra.mxu1 %v1892_v21  ;;  %v2789_v8 = vld [vmem:[#allocation16_spill] sm:$0xff]  ;;  %v2801_v21 = vld [vmem:[#allocation30_spill] sm:$0xff] }
 0x331   :  { %816 = vmatprep.subr.mxu0 %v1861_v10  ;;  %887 = vmatprep.subr.mxu1 %v1898_v23  ;;  %v2790_v10 = vld [vmem:[#allocation25_spill] sm:$0xff]  ;;  %v2803_v23 = vld [vmem:[#allocation12_spill] sm:$0xff] }
 0x332   :  { %817 = vmatpush1.msra.mxu0 %v1867_v12  ;;  %888 = vmatpush1.msra.mxu1 %v1904_v25  ;;  %v2792_v12 = vld [vmem:[#allocation26_spill] sm:$0xff] }
 0x333   :  { %818 = vmatprep.subr.mxu0 %v1875_v15  ;;  %889 = vmatprep.subr.mxu1 %v1910_v27  ;;  %v2795_v15 = vld [vmem:[#allocation20_spill] sm:$0xff] }
 0x334   :  { %819 = vmatpush1.msra.mxu0 %v1881_v17  ;;  %890 = vmatpush1.msra.mxu1 %v1916_v29  ;;  %v2797_v17 = vld [vmem:[#allocation22_spill] sm:$0xff] }
 0x335   :  { %820 = vmatprep.subr.mxu0 %v1889_v20  ;;  %891 = vmatprep.subr.mxu1 %v1922_v31  ;;  %v2800_v20 = vmov 0.0  }
 0x336   :  { %821 = vmatpush1.msra.mxu0 %v1895_v22  ;;  %892 = vmatpush1.msra.mxu1 %v1928_v33  ;;  %v2306_v22 = vld [vmem:[#allocation5 + $0x1e8] sm:$0xff]  ;;  %v632_v33 = vld [vmem:[#allocation2 + $0x78] sm:$0xff] }
 0x337   :  { %822 = vmatprep.subr.mxu0 %v1901_v24  ;;  %893 = vmatprep.subr.mxu1 %v1934_v35  ;;  %2802 = vst [vmem:[#allocation11_spill] sm:$0xff] %v2306_v22  ;;  %v629_v24 = vld [vmem:[#allocation2 + $0x60] sm:$0xff] }
 0x338   :  { %823 = vmatpush1.msra.mxu0 %v1907_v26  ;;  %894 = vmatpush1.msra.mxu1 %v1940_v37  ;;  %v630_v26 = vld [vmem:[#allocation2 + $0x68] sm:$0xff] }
 0x339   :  { %824 = vmatprep.subr.mxu0 %v1913_v28  ;;  %895 = vmatprep.subr.mxu1 %v1946_v39 }
 0x33a   :  { %825 = vmatpush1.msra.mxu0 %v1919_v30  ;;  %896 = vmatpush1.msra.mxu1 %v1952_v41 }
 0x33b   :  { %826 = vmatprep.subr.mxu0 %v1925_v32  ;;  %897 = vmatprep.subr.mxu1 %v1958_v43 }
 0x33c   :  { %827 = vmatpush1.msra.mxu0 %v1931_v34  ;;  %898 = vmatpush1.msra.mxu1 %v1964_v45 }
 0x33d   :  { %828 = vmatprep.subr.mxu0 %v1937_v36  ;;  %899 = vmatprep.subr.mxu1 %v1970_v47  ;;  %v631_v36 = vld [vmem:[#allocation2 + $0x70] sm:$0xff] }
 0x33e   :  { %829 = vmatpush1.msra.mxu0 %v1943_v38  ;;  %900 = vmatpush1.msra.mxu1 %v1976_v49 }
 0x33f   :  { %830 = vmatprep.subr.mxu0 %v1949_v40  ;;  %901 = vmatprep.subr.mxu1 %v1982_v51 }
 0x340   :  { %831 = vmatpush1.msra.mxu0 %v2783_v2  ;;  %902 = vmatpush1.msra.mxu1 %v2784_v3  ;;  %v2341_v2 = vld [vmem:[#allocation5 + $0x1b0] sm:$0xff] }
 0x341   :  { %832 = vmatprep.subr.mxu0 %v2785_v4  ;;  %903 = vmatprep.subr.mxu1 %v2786_v5  ;;  %v2344_v4 = vld [vmem:[#allocation5 + $0x188] sm:$0xff] }
 0x342   :  { %833 = vmatpush1.msra.mxu0 %v2787_v6  ;;  %904 = vmatpush1.msra.mxu1 %v2788_v7  ;;  %v2347_v6 = vld [vmem:[#allocation5 + $0x198] sm:$0xff] }
 0x343   :  { %834 = vmatprep.subr.mxu0 %v2789_v8  ;;  %905 = vmatprep.subr.mxu1 %v2790_v10  ;;  %v2350_v8 = vld [vmem:[#allocation5 + $0x180] sm:$0xff] }
 0x344   :  { %835 = vmatpush1.msra.mxu0 %v2791_v11  ;;  %906 = vmatpush1.msra.mxu1 %v2792_v12  ;;  %v2353_v11 = vld [vmem:[#allocation5 + $0x190] sm:$0xff] }
 0x345   :  { %836 = vmatprep.subr.mxu0 %v2793_v13  ;;  %907 = vmatprep.subr.mxu1 %v2794_v14  ;;  %v2356_v13 = vld [vmem:[#allocation5 + $0x168] sm:$0xff] }
 0x346   :  { %837 = vmatpush1.msra.mxu0 %v2795_v15  ;;  %908 = vmatpush1.msra.mxu1 %v2796_v16 }
 0x347   :  { %838 = vmatprep.subr.mxu0 %v2797_v17  ;;  %909 = vmatprep.subr.mxu1 %v2798_v18 }
 0x348   :  { %839 = vmatpush1.msra.mxu0 %v2799_v19  ;;  %872 = vmatprep.mubr.f32.mxu0 %v2800_v20 }
 0x349   :  { %910 = vmatpush1.msra.mxu1 %v2801_v21  ;;  %943 = vmatprep.mubr.f32.mxu1 %v2800_v20 }
 0x34a   :  { %983 = vmatprep.subr.mxu0 %v2306_v22  ;;  %1054 = vmatprep.subr.mxu1 %v2803_v23  ;;  %v2359_v23 = vld [vmem:[#allocation5 + $0x178] sm:$0xff] }
 0x3e9   :  { %v699_v25 = vpop.f32.mrf.mxu0  ;;  %v770_v31 = vpop.f32.mrf.mxu1 }
 0x3ea   :  { %v775_v27 = vadd.f32 %v699_v25, %v629_v24  ;;  %v777_v39 = vadd.f32 %v770_v31, %v631_v36  ;;  %v2362_v24 = vld [vmem:[#allocation5 + $0x160] sm:$0xff]  ;;  %v2365_v25 = vld [vmem:[#allocation5 + $0x170] sm:$0xff]  ;;  %v2383_v31 = vld [vmem:[#allocation5 + $0x138] sm:$0xff] }
 0x3eb   :  { %v701_v28 = vpop.f32.mrf.mxu0  ;;  %v772_v34 = vpop.f32.mrf.mxu1  ;;  %v2398_v36 = vld [vmem:[#allocation5 + $0x100] sm:$0xff] }
 0x3ec   :  { %v1529_v29 = vmul.f32 -1.442695, %v775_v27  ;;  %v776_v30 = vadd.f32 %v701_v28, %v630_v26  ;;  %v778_v35 = vadd.f32 %v772_v34, %v632_v33  ;;  %v2368_v26 = vld [vmem:[#allocation5 + $0x148] sm:$0xff]  ;;  %v2371_v27 = vld [vmem:[#allocation5 + $0x158] sm:$0xff]  ;;  %v2374_v28 = vld [vmem:[#allocation5 + $0x140] sm:$0xff] }
 0x3ed   :  { %v2389_v33 = vld [vmem:[#allocation5 + $0x130] sm:$0xff]  ;;  %v2392_v34 = vld [vmem:[#allocation5 + $0x108] sm:$0xff] }
 0x3ee   :  { %1598 = vpow2.f32 %v1529_v29  ;;  %v1530_v32 = vmul.f32 -1.442695, %v776_v30  ;;  %v1531_v37 = vmul.f32 -1.442695, %v778_v35  ;;  %v2377_v29 = vld [vmem:[#allocation5 + $0x150] sm:$0xff]  ;;  %v2380_v30 = vld [vmem:[#allocation5 + $0x128] sm:$0xff] }
 0x3ef   :  { %v2395_v35 = vld [vmem:[#allocation5 + $0x118] sm:$0xff] }
 0x3f0   :  { %1600 = vpow2.f32 %v1530_v32  ;;  %v2386_v32 = vld [vmem:[#allocation5 + $0x120] sm:$0xff] }
 0x3f1   :  { %1602 = vpow2.f32 %v1531_v37  ;;  %v2401_v37 = vld [vmem:[#allocation5 + $0x110] sm:$0xff] }
 0x3fb   :  { %v1599_v38 = vpop.eup %1598 }
 0x3fc   :  { %v782_v40 = vadd.f32 1.0, %v1599_v38  ;;  %v2404_v38 = vld [vmem:[#allocation5 + $0xe8] sm:$0xff] }
 0x3fd   :  { %v1601_v41 = vpop.eup %1600 }
 0x3fe   :  { %1604 = vrcp.f32 %v782_v40  ;;  %v788_v43 = vadd.f32 1.0, %v1601_v41  ;;  %v1603_v55 = vpop.eup %1602  ;;  %v2410_v40 = vld [vmem:[#allocation5 + $0xe0] sm:$0xff]  ;;  %v2413_v41 = vld [vmem:[#allocation5 + $0xf0] sm:$0xff] }
 0x3ff   :  { %1606 = vtanh.f32 %v777_v39  ;;  %v795_v61 = vadd.f32 1.0, %v1603_v55  ;;  %v2407_v39 = vld [vmem:[#allocation5 + $0xf8] sm:$0xff] }
 0x400   :  { %1608 = vrcp.f32 %v788_v43  ;;  %v2416_v43 = vld [vmem:[#allocation5 + $0xc8] sm:$0xff]  ;;  %v2419_v55 = vld [vmem:[#allocation5 + $0xd8] sm:$0xff] }
 0x401   :  { %1610 = vrcp.f32 %v795_v61  ;;  %v2434_v61 = vld [vmem:[#allocation5 + $0x88] sm:$0xff] }
 0x40b   :  { %v1605_v42 = vpop.eup %1604 }
 0x40c   :  { %v1607_v53 = vpop.eup %1606 }
 0x40d   :  { %v1609_v63 = vpop.eup %1608  ;;  %v799_v44 = vmul.f32 %v1607_v53, %v1605_v42  ;;  %v2422_v42 = vld [vmem:[#allocation5 + $0xc0] sm:$0xff]  ;;  %v2426_v53 = vld [vmem:[#allocation5 + $0xa8] sm:$0xff] }
 0x40e   :  { %v798_v54 = vmul.f32 %v1609_v63, %v2239_v52  ;;  %v1611_v58 = vpop.eup %1610  ;;  %v2329_v52 = vld [vmem:[#allocation5 + $0x1d0] sm:$0xff]  ;;  %v2430_v63 = vld [vmem:[#allocation5 + $0xa0] sm:$0xff] }
 0x410   :  { %v2311_v57 = vadd.f32 %v799_v44, %v798_v54  ;;  %v2438_v44 = vld [vmem:[#allocation5 + $0x80] sm:$0xff] }
 0x411   :  { %2804 = vst [vmem:[#allocation13_spill] sm:$0xff] %v2438_v44 }
 0x412   :  { %1612 = vtanh.f32 %v2311_v57 }
 0x41f   :  { %v1613_v0 = vpop.eup %1612 }
 0x420   :  { %v802_v1 = vmul.f32 %v1613_v0, %v1611_v58  ;;  %v806_v0 = vld [vmem:[#allocation2 + $0x90] sm:$0xff] }
 0x422   :  { %873 = vmatmul.mubr.f32.vlgmr.msra.gmra.mxu0 %v802_v1  ;;  %944 = vmatmul.mubr.f32.vlgmr.msra.gmra.mxu1 %v802_v1 }
 0x423   :  { %984 = vmatpush1.msra.mxu0 %v2314_v48  ;;  %1055 = vmatpush1.msra.mxu1 %v2317_v50 }
 0x424   :  { %985 = vmatprep.subr.mxu0 %v2320_v46  ;;  %1056 = vmatprep.subr.mxu1 %v2323_v59 }
 0x425   :  { %986 = vmatpush1.msra.mxu0 %v2326_v60  ;;  %1057 = vmatpush1.msra.mxu1 %v2329_v52 }
 0x426   :  { %987 = vmatprep.subr.mxu0 %v2332_v9  ;;  %1058 = vmatprep.subr.mxu1 %v2335_v56 }
 0x427   :  { %988 = vmatpush1.msra.mxu0 %v2338_v62  ;;  %1059 = vmatpush1.msra.mxu1 %v2341_v2 }
 0x428   :  { %989 = vmatprep.subr.mxu0 %v2344_v4  ;;  %1060 = vmatprep.subr.mxu1 %v2347_v6 }
 0x429   :  { %990 = vmatpush1.msra.mxu0 %v2350_v8  ;;  %1061 = vmatpush1.msra.mxu1 %v2353_v11 }
 0x42a   :  { %991 = vmatprep.subr.mxu0 %v2356_v13  ;;  %1062 = vmatprep.subr.mxu1 %v2359_v23 }
 0x42b   :  { %992 = vmatpush1.msra.mxu0 %v2362_v24  ;;  %1063 = vmatpush1.msra.mxu1 %v2365_v25 }
 0x42c   :  { %993 = vmatprep.subr.mxu0 %v2368_v26  ;;  %1064 = vmatprep.subr.mxu1 %v2371_v27 }
 0x42d   :  { %994 = vmatpush1.msra.mxu0 %v2374_v28  ;;  %1065 = vmatpush1.msra.mxu1 %v2377_v29 }
 0x42e   :  { %995 = vmatprep.subr.mxu0 %v2380_v30  ;;  %1066 = vmatprep.subr.mxu1 %v2383_v31 }
 0x42f   :  { %996 = vmatpush1.msra.mxu0 %v2386_v32  ;;  %1067 = vmatpush1.msra.mxu1 %v2389_v33 }
 0x430   :  { %997 = vmatprep.subr.mxu0 %v2392_v34  ;;  %1068 = vmatprep.subr.mxu1 %v2395_v35 }
 0x431   :  { %998 = vmatpush1.msra.mxu0 %v2398_v36  ;;  %1069 = vmatpush1.msra.mxu1 %v2401_v37 }
 0x432   :  { %999 = vmatprep.subr.mxu0 %v2404_v38  ;;  %1070 = vmatprep.subr.mxu1 %v2407_v39 }
 0x433   :  { %1000 = vmatpush1.msra.mxu0 %v2410_v40  ;;  %1071 = vmatpush1.msra.mxu1 %v2413_v41 }
 0x434   :  { %1001 = vmatprep.subr.mxu0 %v2416_v43  ;;  %1072 = vmatprep.subr.mxu1 %v2419_v55 }
 0x435   :  { %1002 = vmatpush1.msra.mxu0 %v2422_v42  ;;  %1073 = vmatpush1.msra.mxu1 %v1964_v45  ;;  %v2442_v45 = vld [vmem:[#allocation5 + $0x68] sm:$0xff] }
 0x436   :  { %1003 = vmatprep.subr.mxu0 %v2426_v53  ;;  %1074 = vmatprep.subr.mxu1 %v1970_v47  ;;  %2805 = vst [vmem:[#allocation19_spill] sm:$0xff] %v2442_v45  ;;  %v2446_v47 = vld [vmem:[#allocation5 + $0x60] sm:$0xff] }
 0x437   :  { %1004 = vmatpush1.msra.mxu0 %v2430_v63  ;;  %1075 = vmatpush1.msra.mxu1 %v1976_v49  ;;  %2806 = vst [vmem:[#allocation14_spill] sm:$0xff] %v2446_v47  ;;  %v2450_v49 = vld [vmem:[#allocation5 + $0x48] sm:$0xff] }
 0x438   :  { %1005 = vmatprep.subr.mxu0 %v2434_v61  ;;  %1076 = vmatprep.subr.mxu1 %v1982_v51  ;;  %2807 = vst [vmem:[#allocation21_spill] sm:$0xff] %v2450_v49  ;;  %v2454_v51 = vld [vmem:[#allocation5 + $0x40] sm:$0xff] }
 0x439   :  { %1006 = vmatpush1.msra.mxu0 %v2438_v44  ;;  %1077 = vmatpush1.msra.mxu1 %v2784_v3  ;;  %2808 = vst [vmem:[#allocation15_spill] sm:$0xff] %v2454_v51  ;;  %v2458_v3 = vld [vmem:[#allocation5 + $0x28] sm:$0xff] }
 0x43a   :  { %1007 = vmatprep.subr.mxu0 %v2442_v45  ;;  %1078 = vmatprep.subr.mxu1 %v2786_v5  ;;  %2809 = vst [vmem:[#allocation23_spill] sm:$0xff] %v2458_v3  ;;  %v2471_v5 = vld [vmem:[#allocation5 + $0x1f8] sm:$0xff] }
 0x43b   :  { %1008 = vmatpush1.msra.mxu0 %v2446_v47  ;;  %1079 = vmatpush1.msra.mxu1 %v2788_v7  ;;  %2810 = vst [vmem:[#allocation16_spill] sm:$0xff] %v2471_v5  ;;  %v804_v7 = vld [vmem:[#allocation2 + $0x80] sm:$0xff] }
 0x43c   :  { %1009 = vmatprep.subr.mxu0 %v2450_v49  ;;  %1080 = vmatprep.subr.mxu1 %v2790_v10 }
 0x43d   :  { %1010 = vmatpush1.msra.mxu0 %v2454_v51  ;;  %1081 = vmatpush1.msra.mxu1 %v2792_v12  ;;  %v805_v12 = vld [vmem:[#allocation2 + $0x88] sm:$0xff] }
 0x43e   :  { %1011 = vmatprep.subr.mxu0 %v2458_v3  ;;  %1082 = vmatprep.subr.mxu1 %v2794_v14 }
 0x43f   :  { %1012 = vmatpush1.msra.mxu0 %v2795_v15  ;;  %1083 = vmatpush1.msra.mxu1 %v2796_v16 }
 0x440   :  { %1013 = vmatprep.subr.mxu0 %v2797_v17  ;;  %1084 = vmatprep.subr.mxu1 %v2798_v18 }
 0x441   :  { %1014 = vmatpush1.msra.mxu0 %v2799_v19  ;;  %1047 = vmatprep.mubr.f32.mxu0 %v2800_v20 }
 0x442   :  { %1085 = vmatpush1.msra.mxu1 %v2801_v21  ;;  %1118 = vmatprep.mubr.f32.mxu1 %v2800_v20  ;;  %v807_v21 = vld [vmem:[#allocation2 + $0x98] sm:$0xff] }
 0x443   :  { %1158 = vmatprep.subr.mxu0 %v2306_v22  ;;  %1229 = vmatprep.subr.mxu1 %v2471_v5 }
 0x4e2   :  { %v874_v10 = vpop.f32.mrf.mxu0  ;;  %v945_v18 = vpop.f32.mrf.mxu1 }
 0x4e3   :  { %v950_v14 = vadd.f32 %v874_v10, %v804_v7  ;;  %v952_v20 = vadd.f32 %v945_v18, %v806_v0  ;;  %v2543_v0 = vld [vmem:[#allocation5 + $0x58] sm:$0xff] }
 0x4e4   :  { %v876_v15 = vpop.f32.mrf.mxu0  ;;  %v947_v54 = vpop.f32.mrf.mxu1  ;;  %2814 = vst [vmem:[#allocation18_spill] sm:$0xff] %v2543_v0 }
 0x4e5   :  { %v1532_v16 = vmul.f32 -1.442695, %v950_v14  ;;  %v951_v17 = vadd.f32 %v876_v15, %v805_v12  ;;  %v953_v58 = vadd.f32 %v947_v54, %v807_v21  ;;  %v2535_v54 = vld [vmem:[#allocation5 + $0x78] sm:$0xff] }
 0x4e6   :  { %2812 = vst [vmem:[#allocation17_spill] sm:$0xff] %v2535_v54 }
 0x4e7   :  { %1614 = vpow2.f32 %v1532_v16  ;;  %v1533_v19 = vmul.f32 -1.442695, %v951_v17  ;;  %v1534_v1 = vmul.f32 -1.442695, %v953_v58  ;;  %v2539_v58 = vld [vmem:[#allocation5 + $0x70] sm:$0xff] }
 0x4e8   :  { %2813 = vst [vmem:[#allocation26_spill] sm:$0xff] %v2539_v58 }
 0x4e9   :  { %1616 = vpow2.f32 %v1533_v19 }
 0x4ea   :  { %1618 = vpow2.f32 %v1534_v1  ;;  %v2815_v1 = vld [vmem:[#allocation15_spill] sm:$0xff] }
 0x4f4   :  { %v1615_v22 = vpop.eup %1614 }
 0x4f5   :  { %v957_v3 = vadd.f32 1.0, %v1615_v22 }
 0x4f6   :  { %v1617_v5 = vpop.eup %1616 }
 0x4f7   :  { %1620 = vrcp.f32 %v957_v3  ;;  %v963_v51 = vadd.f32 1.0, %v1617_v5  ;;  %v1619_v7 = vpop.eup %1618  ;;  %v2527_v3 = vld [vmem:[#allocation5 + $0x98] sm:$0xff]  ;;  %v2531_v5 = vld [vmem:[#allocation5 + $0x90] sm:$0xff] }
 0x4f8   :  { %1622 = vtanh.f32 %v952_v20  ;;  %v970_v15 = vadd.f32 1.0, %v1619_v7  ;;  %v2515_v20 = vld [vmem:[#allocation5 + $0xd0] sm:$0xff]  ;;  %2811 = vst [vmem:[#allocation25_spill] sm:$0xff] %v2531_v5 }
 0x4f9   :  { %1624 = vrcp.f32 %v963_v51  ;;  %v2523_v51 = vld [vmem:[#allocation5 + $0xb0] sm:$0xff] }
 0x4fa   :  { %1626 = vrcp.f32 %v970_v15  ;;  %v2547_v7 = vld [vmem:[#allocation5 + $0x50] sm:$0xff] }
 0x4fb   :  { %2816 = vst [vmem:[#allocation27_spill] sm:$0xff] %v2547_v7  ;;  %v2557_v15 = vld [vmem:[#allocation5 + $0x30] sm:$0xff] }
 0x4fc   :  { %2820 = vst [vmem:[#allocation22_spill] sm:$0xff] %v2557_v15 }
 0x504   :  { %v1621_v10 = vpop.eup %1620 }
 0x505   :  { %v1623_v12 = vpop.eup %1622 }
 0x506   :  { %v1625_v14 = vpop.eup %1624  ;;  %v974_v16 = vmul.f32 %v1623_v12, %v1621_v10  ;;  %v2817_v10 = vld [vmem:[#allocation23_spill] sm:$0xff]  ;;  %v2551_v12 = vld [vmem:[#allocation5 + $0x38] sm:$0xff] }
 0x507   :  { %v973_v17 = vmul.f32 %v1625_v14, %v2311_v57  ;;  %v1627_v22 = vpop.eup %1626  ;;  %v2519_v57 = vld [vmem:[#allocation5 + $0xb8] sm:$0xff]  ;;  %2818 = vst [vmem:[#allocation20_spill] sm:$0xff] %v2551_v12  ;;  %v2554_v14 = vld [vmem:[#allocation5 + $0x20] sm:$0xff] }
 0x508   :  { %2819 = vst [vmem:[#allocation28_spill] sm:$0xff] %v2554_v14 }
 0x509   :  { %v2475_v19 = vadd.f32 %v974_v16, %v973_v17  ;;  %v2560_v16 = vld [vmem:[#allocation5 + $0x8] sm:$0xff]  ;;  %v2563_v17 = vld [vmem:[#allocation5 + $0x18] sm:$0xff] }
 0x50a   :  { %2821 = vst [vmem:[#allocation29_spill] sm:$0xff] %v2560_v16  ;;  %2822 = vst [vmem:[#allocation24_spill] sm:$0xff] %v2563_v17 }
 0x50b   :  { %1628 = vtanh.f32 %v2475_v19 }
 0x518   :  { %v1629_v18 = vpop.eup %1628 }
 0x519   :  { %v977_v21 = vmul.f32 %v1629_v18, %v1627_v22  ;;  %v2566_v22 = vld [vmem:[#allocation5] sm:$0xff]  ;;  %v2824_v18 = vmov 0.0  }
 0x51a   :  { %2823 = vst [vmem:[#allocation30_spill] sm:$0xff] %v2566_v22 }
 0x51b   :  { %1048 = vmatmul.mubr.f32.vlgmr.msra.gmra.mxu0 %v977_v21  ;;  %1119 = vmatmul.mubr.f32.vlgmr.msra.gmra.mxu1 %v977_v21  ;;  %v2570_v21 = vld [vmem:[#allocation5 + $0x10] sm:$0xff] }
 0x51c   :  { %1159 = vmatpush1.msra.mxu0 %v2314_v48  ;;  %1230 = vmatpush1.msra.mxu1 %v2317_v50  ;;  %2825 = vst [vmem:[#allocation12_spill] sm:$0xff] %v2570_v21 }
 0x51d   :  { %1160 = vmatprep.subr.mxu0 %v2320_v46  ;;  %1231 = vmatprep.subr.mxu1 %v2323_v59 }
 0x51e   :  { %1161 = vmatpush1.msra.mxu0 %v2326_v60  ;;  %1232 = vmatpush1.msra.mxu1 %v2329_v52 }
 0x51f   :  { %1162 = vmatprep.subr.mxu0 %v2332_v9  ;;  %1233 = vmatprep.subr.mxu1 %v2335_v56 }
 0x520   :  { %1163 = vmatpush1.msra.mxu0 %v2338_v62  ;;  %1234 = vmatpush1.msra.mxu1 %v2341_v2 }
 0x521   :  { %1164 = vmatprep.subr.mxu0 %v2344_v4  ;;  %1235 = vmatprep.subr.mxu1 %v2347_v6 }
 0x522   :  { %1165 = vmatpush1.msra.mxu0 %v2350_v8  ;;  %1236 = vmatpush1.msra.mxu1 %v2353_v11 }
 0x523   :  { %1166 = vmatprep.subr.mxu0 %v2356_v13  ;;  %1237 = vmatprep.subr.mxu1 %v2359_v23 }
 0x524   :  { %1167 = vmatpush1.msra.mxu0 %v2362_v24  ;;  %1238 = vmatpush1.msra.mxu1 %v2365_v25 }
 0x525   :  { %1168 = vmatprep.subr.mxu0 %v2368_v26  ;;  %1239 = vmatprep.subr.mxu1 %v2371_v27 }
 0x526   :  { %1169 = vmatpush1.msra.mxu0 %v2374_v28  ;;  %1240 = vmatpush1.msra.mxu1 %v2377_v29 }
 0x527   :  { %1170 = vmatprep.subr.mxu0 %v2380_v30  ;;  %1241 = vmatprep.subr.mxu1 %v2383_v31 }
 0x528   :  { %1171 = vmatpush1.msra.mxu0 %v2386_v32  ;;  %1242 = vmatpush1.msra.mxu1 %v2389_v33 }
 0x529   :  { %1172 = vmatprep.subr.mxu0 %v2392_v34  ;;  %1243 = vmatprep.subr.mxu1 %v2395_v35 }
 0x52a   :  { %1173 = vmatpush1.msra.mxu0 %v2398_v36  ;;  %1244 = vmatpush1.msra.mxu1 %v2401_v37 }
 0x52b   :  { %1174 = vmatprep.subr.mxu0 %v2404_v38  ;;  %1245 = vmatprep.subr.mxu1 %v2407_v39 }
 0x52c   :  { %1175 = vmatpush1.msra.mxu0 %v2410_v40  ;;  %1246 = vmatpush1.msra.mxu1 %v2413_v41 }
 0x52d   :  { %1176 = vmatprep.subr.mxu0 %v2416_v43  ;;  %1247 = vmatprep.subr.mxu1 %v2419_v55 }
 0x52e   :  { %1177 = vmatpush1.msra.mxu0 %v2422_v42  ;;  %1248 = vmatpush1.msra.mxu1 %v2515_v20 }
 0x52f   :  { %1178 = vmatprep.subr.mxu0 %v2426_v53  ;;  %1249 = vmatprep.subr.mxu1 %v2519_v57 }
 0x530   :  { %1179 = vmatpush1.msra.mxu0 %v2430_v63  ;;  %1250 = vmatpush1.msra.mxu1 %v2523_v51 }
 0x531   :  { %1180 = vmatprep.subr.mxu0 %v2434_v61  ;;  %1251 = vmatprep.subr.mxu1 %v2527_v3 }
 0x532   :  { %1181 = vmatpush1.msra.mxu0 %v2438_v44  ;;  %1252 = vmatpush1.msra.mxu1 %v2531_v5 }
 0x533   :  { %1182 = vmatprep.subr.mxu0 %v2442_v45  ;;  %1253 = vmatprep.subr.mxu1 %v2535_v54  ;;  %v981_v54 = vld [vmem:[#allocation2 + $0xb0] sm:$0xff] }
 0x534   :  { %1183 = vmatpush1.msra.mxu0 %v2446_v47  ;;  %1254 = vmatpush1.msra.mxu1 %v2539_v58  ;;  %v982_v58 = vld [vmem:[#allocation2 + $0xb8] sm:$0xff] }
 0x535   :  { %1184 = vmatprep.subr.mxu0 %v2450_v49  ;;  %1255 = vmatprep.subr.mxu1 %v2543_v0 }
 0x536   :  { %1185 = vmatpush1.msra.mxu0 %v2815_v1  ;;  %1256 = vmatpush1.msra.mxu1 %v2547_v7 }
 0x537   :  { %1186 = vmatprep.subr.mxu0 %v2817_v10  ;;  %1257 = vmatprep.subr.mxu1 %v2551_v12  ;;  %v980_v10 = vld [vmem:[#allocation2 + $0xa8] sm:$0xff] }
 0x538   :  { %1187 = vmatpush1.msra.mxu0 %v2554_v14  ;;  %1258 = vmatpush1.msra.mxu1 %v2557_v15  ;;  %v2826_v15 = vld [vmem:[#allocation11_spill] sm:$0xff]  ;;  %v2827_v14 = vld [vmem:[#allocation16_spill] sm:$0xff] }
 0x539   :  { %1188 = vmatprep.subr.mxu0 %v2560_v16  ;;  %1259 = vmatprep.subr.mxu1 %v2563_v17  ;;  %v979_v16 = vld [vmem:[#allocation2 + $0xa0] sm:$0xff] }
 0x53a   :  { %1189 = vmatpush1.msra.mxu0 %v2566_v22  ;;  %1222 = vmatprep.mubr.f32.mxu0 %v2824_v18 }
 0x53b   :  { %1260 = vmatpush1.msra.mxu1 %v2570_v21  ;;  %1293 = vmatprep.mubr.f32.mxu1 %v2824_v18 }
 0x53c   :  { %1333 = vmatprep.subr.mxu0 %v2826_v15  ;;  %1404 = vmatprep.subr.mxu1 %v2827_v14 }
 0x5db   :  { %v1049_v12 = vpop.f32.mrf.mxu0  ;;  %v1120_v22 = vpop.f32.mrf.mxu1 }
 0x5dc   :  { %v1125_v17 = vadd.f32 %v1049_v12, %v979_v16  ;;  %v1127_v15 = vadd.f32 %v1120_v22, %v981_v54 }
 0x5dd   :  { %v1051_v7 = vpop.f32.mrf.mxu0  ;;  %v1122_v47 = vpop.f32.mrf.mxu1 }
 0x5de   :  { %v1535_v1 = vmul.f32 -1.442695, %v1125_v17  ;;  %v1126_v0 = vadd.f32 %v1051_v7, %v980_v10  ;;  %v1128_v21 = vadd.f32 %v1122_v47, %v982_v58 }
 0x5e0   :  { %1630 = vpow2.f32 %v1535_v1  ;;  %v1536_v49 = vmul.f32 -1.442695, %v1126_v0  ;;  %v1537_v18 = vmul.f32 -1.442695, %v1128_v21 }
 0x5e2   :  { %1632 = vpow2.f32 %v1536_v49 }
 0x5e3   :  { %1634 = vpow2.f32 %v1537_v18  ;;  %v1329_v18 = vld [vmem:[#allocation2 + $0xe0] sm:$0xff] }
 0x5ed   :  { %v1631_v45 = vpop.eup %1630 }
 0x5ee   :  { %v1132_v5 = vadd.f32 1.0, %v1631_v45 }
 0x5ef   :  { %v1633_v14 = vpop.eup %1632 }
 0x5f0   :  { %1636 = vrcp.f32 %v1132_v5  ;;  %v1138_v44 = vadd.f32 1.0, %v1633_v14  ;;  %v1635_v12 = vpop.eup %1634 }
 0x5f1   :  { %1638 = vtanh.f32 %v1127_v15  ;;  %v1145_v0 = vadd.f32 1.0, %v1635_v12  ;;  %v1330_v15 = vld [vmem:[#allocation2 + $0xe8] sm:$0xff] }
 0x5f2   :  { %1640 = vrcp.f32 %v1138_v44 }
 0x5f3   :  { %1642 = vrcp.f32 %v1145_v0 }
 0x5fd   :  { %v1637_v7 = vpop.eup %1636 }
 0x5fe   :  { %v1639_v1 = vpop.eup %1638 }
 0x5ff   :  { %v1641_v10 = vpop.eup %1640  ;;  %v1149_v49 = vmul.f32 %v1639_v1, %v1637_v7 }
 0x600   :  { %v1148_v16 = vmul.f32 %v1641_v10, %v2475_v19  ;;  %v1643_v45 = vpop.eup %1642 }
 0x602   :  { %v2577_v47 = vadd.f32 %v1149_v49, %v1148_v16  ;;  %v1332_v49 = vld [vmem:[#allocation2 + $0xf8] sm:$0xff] }
 0x604   :  { %1644 = vtanh.f32 %v2577_v47 }
 0x611   :  { %v1645_v54 = vpop.eup %1644 }
 0x612   :  { %v1152_v58 = vmul.f32 %v1645_v54, %v1643_v45  ;;  %v1331_v45 = vld [vmem:[#allocation2 + $0xf0] sm:$0xff] }
 0x614   :  { %1223 = vmatmul.mubr.f32.vlgmr.msra.gmra.mxu0 %v1152_v58  ;;  %1294 = vmatmul.mubr.f32.vlgmr.msra.gmra.mxu1 %v1152_v58 }
 0x615   :  { %1334 = vmatpush1.msra.mxu0 %v2314_v48  ;;  %1405 = vmatpush1.msra.mxu1 %v2317_v50  ;;  %v2828_v48 = vld [vmem:[#allocation13_spill] sm:$0xff] }
 0x616   :  { %1335 = vmatprep.subr.mxu0 %v2320_v46  ;;  %1406 = vmatprep.subr.mxu1 %v2323_v59  ;;  %v2829_v50 = vld [vmem:[#allocation25_spill] sm:$0xff]  ;;  %v2830_v46 = vld [vmem:[#allocation19_spill] sm:$0xff] }
 0x617   :  { %1336 = vmatpush1.msra.mxu0 %v2326_v60  ;;  %1407 = vmatpush1.msra.mxu1 %v2329_v52  ;;  %v2831_v59 = vld [vmem:[#allocation17_spill] sm:$0xff]  ;;  %v2832_v60 = vld [vmem:[#allocation14_spill] sm:$0xff] }
 0x618   :  { %1337 = vmatprep.subr.mxu0 %v2332_v9  ;;  %1408 = vmatprep.subr.mxu1 %v2335_v56  ;;  %v2833_v52 = vld [vmem:[#allocation26_spill] sm:$0xff]  ;;  %v2834_v9 = vld [vmem:[#allocation21_spill] sm:$0xff] }
 0x619   :  { %1338 = vmatpush1.msra.mxu0 %v2338_v62  ;;  %1409 = vmatpush1.msra.mxu1 %v2341_v2  ;;  %v2835_v56 = vld [vmem:[#allocation18_spill] sm:$0xff]  ;;  %v2836_v62 = vld [vmem:[#allocation15_spill] sm:$0xff] }
 0x61a   :  { %1339 = vmatprep.subr.mxu0 %v2344_v4  ;;  %1410 = vmatprep.subr.mxu1 %v2347_v6  ;;  %v2837_v2 = vld [vmem:[#allocation27_spill] sm:$0xff]  ;;  %v2839_v6 = vld [vmem:[#allocation20_spill] sm:$0xff] }
 0x61b   :  { %1340 = vmatpush1.msra.mxu0 %v2350_v8  ;;  %1411 = vmatpush1.msra.mxu1 %v2353_v11  ;;  %v2838_v4 = vld [vmem:[#allocation23_spill] sm:$0xff]  ;;  %v2840_v8 = vld [vmem:[#allocation28_spill] sm:$0xff]  ;;  %v2841_v11 = vld [vmem:[#allocation22_spill] sm:$0xff] }
 0x61c   :  { %1341 = vmatprep.subr.mxu0 %v2356_v13  ;;  %1412 = vmatprep.subr.mxu1 %v2359_v23  ;;  %v2842_v13 = vld [vmem:[#allocation29_spill] sm:$0xff]  ;;  %v2843_v23 = vld [vmem:[#allocation24_spill] sm:$0xff] }
 0x61d   :  { %1342 = vmatpush1.msra.mxu0 %v2362_v24  ;;  %1413 = vmatpush1.msra.mxu1 %v2365_v25  ;;  %v2844_v24 = vld [vmem:[#allocation30_spill] sm:$0xff]  ;;  %v2845_v25 = vmov 0.0  }
 0x61e   :  { %1343 = vmatprep.subr.mxu0 %v2368_v26  ;;  %1414 = vmatprep.subr.mxu1 %v2371_v27  ;;  %v2846_v26 = vld [vmem:[#allocation12_spill] sm:$0xff]  ;;  %v1154_v27 = vld [vmem:[#allocation2 + $0xc0] sm:$0xff] }
 0x61f   :  { %1344 = vmatpush1.msra.mxu0 %v2374_v28  ;;  %1415 = vmatpush1.msra.mxu1 %v2377_v29  ;;  %v1155_v29 = vld [vmem:[#allocation2 + $0xc8] sm:$0xff] }
 0x620   :  { %1345 = vmatprep.subr.mxu0 %v2380_v30  ;;  %1416 = vmatprep.subr.mxu1 %v2383_v31 }
 0x621   :  { %1346 = vmatpush1.msra.mxu0 %v2386_v32  ;;  %1417 = vmatpush1.msra.mxu1 %v2389_v33 }
 0x622   :  { %1347 = vmatprep.subr.mxu0 %v2392_v34  ;;  %1418 = vmatprep.subr.mxu1 %v2395_v35 }
 0x623   :  { %1348 = vmatpush1.msra.mxu0 %v2398_v36  ;;  %1419 = vmatpush1.msra.mxu1 %v2401_v37  ;;  %v1157_v36 = vld [vmem:[#allocation2 + $0xd8] sm:$0xff] }
 0x624   :  { %1349 = vmatprep.subr.mxu0 %v2404_v38  ;;  %1420 = vmatprep.subr.mxu1 %v2407_v39  ;;  %v1156_v39 = vld [vmem:[#allocation2 + $0xd0] sm:$0xff] }
 0x625   :  { %1350 = vmatpush1.msra.mxu0 %v2410_v40  ;;  %1421 = vmatpush1.msra.mxu1 %v2413_v41 }
 0x626   :  { %1351 = vmatprep.subr.mxu0 %v2416_v43  ;;  %1422 = vmatprep.subr.mxu1 %v2419_v55 }
 0x627   :  { %1352 = vmatpush1.msra.mxu0 %v2422_v42  ;;  %1423 = vmatpush1.msra.mxu1 %v2515_v20 }
 0x628   :  { %1353 = vmatprep.subr.mxu0 %v2426_v53  ;;  %1424 = vmatprep.subr.mxu1 %v2519_v57 }
 0x629   :  { %1354 = vmatpush1.msra.mxu0 %v2430_v63  ;;  %1425 = vmatpush1.msra.mxu1 %v2523_v51 }
 0x62a   :  { %1355 = vmatprep.subr.mxu0 %v2434_v61  ;;  %1426 = vmatprep.subr.mxu1 %v2527_v3 }
 0x62b   :  { %1356 = vmatpush1.msra.mxu0 %v2828_v48  ;;  %1427 = vmatpush1.msra.mxu1 %v2829_v50 }
 0x62c   :  { %1357 = vmatprep.subr.mxu0 %v2830_v46  ;;  %1428 = vmatprep.subr.mxu1 %v2831_v59 }
 0x62d   :  { %1358 = vmatpush1.msra.mxu0 %v2832_v60  ;;  %1429 = vmatpush1.msra.mxu1 %v2833_v52 }
 0x62e   :  { %1359 = vmatprep.subr.mxu0 %v2834_v9  ;;  %1430 = vmatprep.subr.mxu1 %v2835_v56 }
 0x62f   :  { %1360 = vmatpush1.msra.mxu0 %v2836_v62  ;;  %1431 = vmatpush1.msra.mxu1 %v2837_v2 }
 0x630   :  { %1361 = vmatprep.subr.mxu0 %v2838_v4  ;;  %1432 = vmatprep.subr.mxu1 %v2839_v6 }
 0x631   :  { %1362 = vmatpush1.msra.mxu0 %v2840_v8  ;;  %1433 = vmatpush1.msra.mxu1 %v2841_v11 }
 0x632   :  { %1363 = vmatprep.subr.mxu0 %v2842_v13  ;;  %1434 = vmatprep.subr.mxu1 %v2843_v23 }
 0x633   :  { %1364 = vmatpush1.msra.mxu0 %v2844_v24  ;;  %1397 = vmatprep.mubr.f32.mxu0 %v2845_v25 }
 0x634   :  { %1435 = vmatpush1.msra.mxu1 %v2846_v26  ;;  %1468 = vmatprep.mubr.f32.mxu1 %v2845_v25 }
 0x6d4   :  { %v1224_v28 = vpop.f32.mrf.mxu0  ;;  %v1295_v34 = vpop.f32.mrf.mxu1 }
 0x6d5   :  { %v1300_v30 = vadd.f32 %v1224_v28, %v1154_v27  ;;  %v1302_v43 = vadd.f32 %v1295_v34, %v1156_v39 }
 0x6d6   :  { %v1226_v31 = vpop.f32.mrf.mxu0  ;;  %v1297_v37 = vpop.f32.mrf.mxu1 }
 0x6d7   :  { %v1538_v32 = vmul.f32 -1.442695, %v1300_v30  ;;  %v1301_v33 = vadd.f32 %v1226_v31, %v1155_v29  ;;  %v1303_v38 = vadd.f32 %v1297_v37, %v1157_v36 }
 0x6d9   :  { %1646 = vpow2.f32 %v1538_v32  ;;  %v1539_v35 = vmul.f32 -1.442695, %v1301_v33  ;;  %v1540_v40 = vmul.f32 -1.442695, %v1303_v38 }
 0x6db   :  { %1648 = vpow2.f32 %v1539_v35 }
 0x6dc   :  { %1650 = vpow2.f32 %v1540_v40 }
 0x6e6   :  { %v1647_v41 = vpop.eup %1646 }
 0x6e7   :  { %v1307_v55 = vadd.f32 1.0, %v1647_v41 }
 0x6e8   :  { %v1649_v42 = vpop.eup %1648 }
 0x6e9   :  { %1652 = vrcp.f32 %v1307_v55  ;;  %v1313_v53 = vadd.f32 1.0, %v1649_v42  ;;  %v1651_v63 = vpop.eup %1650 }
 0x6ea   :  { %1654 = vtanh.f32 %v1302_v43  ;;  %v1320_v20 = vadd.f32 1.0, %v1651_v63 }
 0x6eb   :  { %1656 = vrcp.f32 %v1313_v53 }
 0x6ec   :  { %1658 = vrcp.f32 %v1320_v20 }
 0x6f6   :  { %v1653_v61 = vpop.eup %1652 }
 0x6f7   :  { %v1655_v44 = vpop.eup %1654 }
 0x6f8   :  { %v1657_v19 = vpop.eup %1656  ;;  %v1324_v57 = vmul.f32 %v1655_v44, %v1653_v61 }
 0x6f9   :  { %v1323_v51 = vmul.f32 %v1657_v19, %v2577_v47  ;;  %v1659_v5 = vpop.eup %1658 }
 0x6fb   :  { %v1325_v3 = vadd.f32 %v1324_v57, %v1323_v51 }
 0x6fd   :  { %1660 = vtanh.f32 %v1325_v3 }
 0x70a   :  { %v1661_v17 = vpop.eup %1660 }
 0x70b   :  { %v1327_v22 = vmul.f32 %v1661_v17, %v1659_v5 }
 0x70d   :  { %1398 = vmatmul.mubr.f32.vlgmr.msra.gmra.mxu0 %v1327_v22  ;;  %1469 = vmatmul.mubr.f32.vlgmr.msra.gmra.mxu1 %v1327_v22 }
 0x7cd   :  { %v1399_v21 = vpop.f32.mrf.mxu0  ;;  %v1470_v10 = vpop.f32.mrf.mxu1 }
 0x7ce   :  { %v1475_v14 = vadd.f32 %v1399_v21, %v1329_v18  ;;  %v1477_v48 = vadd.f32 %v1470_v10, %v1331_v45 }
 0x7cf   :  { %v1401_v12 = vpop.f32.mrf.mxu0  ;;  %v1472_v16 = vpop.f32.mrf.mxu1 }
 0x7d0   :  { %v1541_v7 = vmul.f32 -1.442695, %v1475_v14  ;;  %v1476_v1 = vadd.f32 %v1401_v12, %v1330_v15  ;;  %v1478_v47 = vadd.f32 %v1472_v16, %v1332_v49 }
 0x7d2   :  { %1662 = vpow2.f32 %v1541_v7  ;;  %v1542_v0 = vmul.f32 -1.442695, %v1476_v1  ;;  %v1543_v54 = vmul.f32 -1.442695, %v1478_v47 }
 0x7d4   :  { %1664 = vpow2.f32 %v1542_v0 }
 0x7d5   :  { %1666 = vpow2.f32 %v1543_v54 }
 0x7df   :  { %v1663_v58 = vpop.eup %1662 }
 0x7e0   :  { %v1482_v50 = vadd.f32 1.0, %v1663_v58 }
 0x7e1   :  { %v1665_v46 = vpop.eup %1664 }
 0x7e2   :  { %1668 = vrcp.f32 %v1482_v50  ;;  %v1488_v59 = vadd.f32 1.0, %v1665_v46  ;;  %v1667_v60 = vpop.eup %1666 }
 0x7e3   :  { %1670 = vtanh.f32 %v1477_v48  ;;  %v1495_v62 = vadd.f32 1.0, %v1667_v60 }
 0x7e4   :  { %1672 = vrcp.f32 %v1488_v59 }
 0x7e5   :  { %1674 = vrcp.f32 %v1495_v62 }
 0x7ef   :  { %v1669_v52 = vpop.eup %1668 }
 0x7f0   :  { %v1671_v9 = vpop.eup %1670 }
 0x7f1   :  { %v1673_v56 = vpop.eup %1672  ;;  %v1499_v2 = vmul.f32 %v1671_v9, %v1669_v52 }
 0x7f2   :  { %v1498_v4 = vmul.f32 %v1673_v56, %v1325_v3  ;;  %v1675_v8 = vpop.eup %1674 }
 0x7f4   :  { %v1500_v6 = vadd.f32 %v1499_v2, %v1498_v4 }
 0x7f6   :  { %1676 = vtanh.f32 %v1500_v6 }
 0x803   :  { %v1677_v11 = vpop.eup %1676 }
 0x804   :  { %v1502_v13 = vmul.f32 %v1677_v11, %v1675_v8 }
 0x806   :  { %1503 = vst [vmem:[#allocation7] sm:$0xff] %v1502_v13 }
 0x807   :  { %1793 = shalt.err (!%p1790_p0)
}
 0x808   :  { %1513 = dma.vmem_to_hbm [thread:$0]  %s1511_s1, 128, %s2650_s2, [#allocation4]  }
 0x809   :  { %1806 = dma.done.wait [#allocation4], 128  }
 0x80a   :  { %1807 = vsyncadd [#allocation4], 4294967168 }
 0x80b   :  { %1517 = vsyncpa [#allocation3], 1 }
 0x80c   :  { %1518 = vsyncpa [#allocation6], 1 }
 0x80d   :  { %1519 = vsyncpa [#allocation4], 1 }

</bundles_post_ra>
